<compile_context>
chip_gen: v7x
topology: tpu7x:2x2x1
jax: 0.10.0
libtpu: 0.0.40
codegen_flags: <defaults>
</compile_context>

<pallas_src>
import functools

import jax
import jax.numpy as jnp
from jax import lax
from jax.experimental import pallas as pl
from jax.experimental.pallas import tpu as pltpu


def _round_up(x, m):
    return ((x + m - 1) // m) * m


# --------------------------------------------------------------------------- #
# Kernels
# --------------------------------------------------------------------------- #
def _mix_embed_ln_kernel(ids_ref, tab_ref, g_ref, b_ref, o_ref,
                         *, eps, hidden, tc_pad):
    """ids_ref: (1, 2, tm) int32, lane-dense.  tab_ref: (Ttot, Wpad) resident.

    One MXU matmul gathers T_c[id_c] + T_w[id_w] and (via the folded extra
    column) their row-sum; only the variance reduction remains on the XLU.
    """
    tm = o_ref.shape[0]
    ttot = tab_ref.shape[0]
    ids = ids_ref[...]
    # Cheap lane->sublane relayout of just `tm` int32 ids (per perf review).
    idc = ids[0, 0].reshape(tm, 1)
    idw = ids[0, 1].reshape(tm, 1) + tc_pad
    iota = lax.broadcasted_iota(jnp.int32, (tm, ttot), 1)
    # One hit in the char rows [0, tc_pad) and one in the word rows
    # [tc_pad, Ttot): a single matmul computes T_c[id_c] + T_w[id_w] (+ sums).
    onehot = jnp.logical_or(iota == idc, iota == idw).astype(jnp.float32)
    prod = jnp.dot(onehot, tab_ref[...],
                   precision=lax.Precision.HIGHEST,
                   preferred_element_type=jnp.float32)          # (tm, Wpad)
    h = prod[:, :hidden]
    mean = prod[:, hidden:hidden + 1] * (1.0 / hidden)           # folded sum col
    cent = h - mean
    var = jnp.mean(cent * cent, axis=-1, keepdims=True)
    out = cent * lax.rsqrt(var + eps) * g_ref[...] + b_ref[...]
    o_ref[...] = out.astype(o_ref.dtype)


def _char_embed_ln_kernel(ids_ref, tab_ref, g_ref, b_ref, o_ref,
                          *, eps, hidden):
    """Char-only path: both LN statistics come from folded table columns, so
    the kernel body has no cross-lane reductions at all."""
    tm = o_ref.shape[0]
    ttot = tab_ref.shape[0]
    idc = ids_ref[...][0, 0].reshape(tm, 1)
    iota = lax.broadcasted_iota(jnp.int32, (tm, ttot), 1)
    onehot = (iota == idc).astype(jnp.float32)
    prod = jnp.dot(onehot, tab_ref[...],
                   precision=lax.Precision.HIGHEST,
                   preferred_element_type=jnp.float32)
    h = prod[:, :hidden]
    mean = prod[:, hidden:hidden + 1] * (1.0 / hidden)           # folded sum
    ex2 = prod[:, hidden + 1:hidden + 2] * (1.0 / hidden)        # folded sumsq
    var = ex2 - mean * mean
    out = (h - mean) * lax.rsqrt(var + eps) * g_ref[...] + b_ref[...]
    o_ref[...] = out.astype(o_ref.dtype)


# --------------------------------------------------------------------------- #
# pallas_call wrapper
# --------------------------------------------------------------------------- #
def _embed_ln_call(kernel, id_arrays, table, gamma, beta,
                   *, row_tile=1024, out_dtype=jnp.float32):
    """id_arrays: tuple of (B, S) or flat id arrays; table: (Ttot, Wpad)."""
    flat = [jnp.asarray(a).reshape(-1).astype(jnp.int32) for a in id_arrays]
    n_tok = flat[0].shape[0]                     # N = B * S  (flattened!)
    n_ids = len(flat)
    hidden = gamma.shape[-1]
    ttot, wpad = table.shape

    # Largest sensible row tile, but keep >= 2 grid steps when possible so the
    # ("parallel",) grid axis can shard across both v7x TensorCores.
    tm = min(row_tile, max(8, _round_up((n_tok + 1) // 2, 8)))
    n_pad = _round_up(n_tok, tm)
    n_tiles = n_pad // tm

    # Lane-dense id layout: (n_tiles, n_ids, tm) -> one contiguous DMA per tile
    # (char/word stacked to halve descriptor count).  Pad ids = 0 select the
    # zero padding_idx rows and are sliced off at the end.
    ids = jnp.stack([jnp.pad(a, (0, n_pad - n_tok)) for a in flat], axis=0)
    ids = ids.reshape(n_ids, n_tiles, tm).transpose(1, 0, 2)

    # Explicit VMEM budget: resident table/affine + double-buffered id and
    # output tiles + in-kernel one-hot / matmul temporaries, with headroom.
    tile_bytes = (2 * 8 * tm * 4               # id tiles (sublane padded, x2)
                  + 2 * tm * hidden * 4        # output tiles (x2 buffers)
                  + 3 * tm * ttot * 4          # iota / one-hot temporaries
                  + tm * wpad * 4)             # matmul result
    resident_bytes = table.size * 4 + 4 * wpad * 4
    vmem_limit = min(max(2 * (tile_bytes + resident_bytes) + (4 << 20), 32 << 20),
                     64 << 20)                 # <= v7x physical VMEM

    # Grid-invariant inputs: whole-array VMEM residents (single-buffered).
    resident = pl.BlockSpec(memory_space=pltpu.MemorySpace.VMEM)

    out = pl.pallas_call(
        kernel,
        out_shape=jax.ShapeDtypeStruct((n_pad, hidden), out_dtype),
        grid_spec=pltpu.PrefetchScalarGridSpec(
            num_scalar_prefetch=0,
            grid=(n_tiles,),
            in_specs=[
                pl.BlockSpec((1, n_ids, tm), lambda i: (i, 0, 0)),  # ids
                resident,                                           # table
                resident,                                           # gamma
                resident,                                           # beta
            ],
            out_specs=pl.BlockSpec((tm, hidden), lambda i: (i, 0)),  # lane-dense
        ),
        compiler_params=pltpu.CompilerParams(
            dimension_semantics=("parallel",),
            vmem_limit_bytes=vmem_limit),
    )(ids, table, gamma.reshape(1, hidden), beta.reshape(1, hidden))
    return out[:n_tok]


# --------------------------------------------------------------------------- #
# Module
# --------------------------------------------------------------------------- #
class CustomEmbeddingPallas:
    """JAX/Pallas port of CustomEmbedding (inference semantics)."""

    def __init__(self, char_table_size, word_table_size, char_dim, word_dim,
                 hidden_dim, use_mix_embedding=True, key=None,
                 eps=1e-5, row_tile=1024, out_dtype=jnp.float32):
        if key is None:
            key = jax.random.PRNGKey(0)
        self.use_mix_embedding = use_mix_embedding
        self.hidden_dim = hidden_dim
        self.eps = eps
        self.row_tile = row_tile
        self.out_dtype = out_dtype   # bf16 is a valid choice on v5e if the
                                     # consumer accepts it (halves writeback).

        k1, k2, k3, k4 = jax.random.split(key, 4)
        vc = char_table_size + 2
        vw = word_table_size + 2
        # nn.Embedding default init: N(0, 1), padding_idx=0 row zeroed.
        self.char_table = jax.random.normal(k1, (vc, char_dim), jnp.float32).at[0].set(0.0)
        self.word_table = jax.random.normal(k2, (vw, word_dim), jnp.float32).at[0].set(0.0)
        # nn.Linear(bias=False) default init: U(-1/sqrt(in), 1/sqrt(in)); stored transposed.
        bc = 1.0 / (char_dim ** 0.5)
        bw = 1.0 / (word_dim ** 0.5)
        self.wc_t = jax.random.uniform(k3, (char_dim, hidden_dim), jnp.float32, -bc, bc)
        self.ww_t = jax.random.uniform(k4, (word_dim, hidden_dim), jnp.float32, -bw, bw)
        # LayerNorm params.
        self.gamma = jnp.ones((hidden_dim,), jnp.float32)
        self.beta = jnp.zeros((hidden_dim,), jnp.float32)

        # --- inference-time fold: project tables through the Linear layers ---
        hp = lax.Precision.HIGHEST
        t_c = jnp.dot(self.char_table, self.wc_t, precision=hp)    # (vc, H)
        t_w = jnp.dot(self.word_table, self.ww_t, precision=hp)    # (vw, H)

        # Pad sub-table heights to multiples of 128 (lane-aligned MXU K dim);
        # pad width so the folded LN-statistic columns sit in an aligned tile.
        self.tc_pad = _round_up(vc, 128)
        tw_pad = _round_up(vw, 128)

        w_mix = _round_up(hidden_dim + 1, 128)
        tbl = jnp.zeros((self.tc_pad + tw_pad, w_mix), jnp.float32)
        tbl = tbl.at[:vc, :hidden_dim].set(t_c)
        tbl = tbl.at[:vc, hidden_dim].set(jnp.sum(t_c, axis=1))
        tbl = tbl.at[self.tc_pad:self.tc_pad + vw, :hidden_dim].set(t_w)
        tbl = tbl.at[self.tc_pad:self.tc_pad + vw, hidden_dim].set(jnp.sum(t_w, axis=1))
        self.table_mix = tbl

        w_char = _round_up(hidden_dim + 2, 128)
        tcb = jnp.zeros((self.tc_pad, w_char), jnp.float32)
        tcb = tcb.at[:vc, :hidden_dim].set(t_c)
        tcb = tcb.at[:vc, hidden_dim].set(jnp.sum(t_c, axis=1))
        tcb = tcb.at[:vc, hidden_dim + 1].set(jnp.sum(t_c * t_c, axis=1))
        self.table_char = tcb

    def __call__(self, ids):
        if (self.use_mix_embedding and isinstance(ids, (tuple, list))
                and len(ids) == 2):
            ids_char, ids_word = ids
            B, S = ids_char.shape
            kernel = functools.partial(_mix_embed_ln_kernel, eps=self.eps,
                                       hidden=self.hidden_dim, tc_pad=self.tc_pad)
            out = _embed_ln_call(kernel, (ids_char, ids_word), self.table_mix,
                                 self.gamma, self.beta,
                                 row_tile=self.row_tile, out_dtype=self.out_dtype)
            return out.reshape(B, S, self.hidden_dim)
        else:
            ids_char = ids
            B, S = ids_char.shape
            kernel = functools.partial(_char_embed_ln_kernel, eps=self.eps,
                                       hidden=self.hidden_dim)
            out = _embed_ln_call(kernel, (ids_char,), self.table_char,
                                 self.gamma, self.beta,
                                 row_tile=self.row_tile, out_dtype=self.out_dtype)
            return out.reshape(B, S, self.hidden_dim)


# --------------------------------------------------------------------------- #
# Pure-JAX references
# --------------------------------------------------------------------------- #
def _reference_mix(module, ids_char, ids_word, eps=1e-5):
    hp = lax.Precision.HIGHEST
    ec = jnp.take(module.char_table, ids_char.reshape(-1), axis=0)
    ew = jnp.take(module.word_table, ids_word.reshape(-1), axis=0)
    h = (jnp.dot(ec, module.wc_t, precision=hp)
         + jnp.dot(ew, module.ww_t, precision=hp))
    mu = h.mean(-1, keepdims=True)
    var = ((h - mu) ** 2).mean(-1, keepdims=True)
    return (h - mu) / jnp.sqrt(var + eps) * module.gamma + module.beta


def _reference_char(module, ids_char, eps=1e-5):
    hp = lax.Precision.HIGHEST
    ec = jnp.take(module.char_table, ids_char.reshape(-1), axis=0)
    h = jnp.dot(ec, module.wc_t, precision=hp)
    mu = h.mean(-1, keepdims=True)
    var = ((h - mu) ** 2).mean(-1, keepdims=True)
    return (h - mu) / jnp.sqrt(var + eps) * module.gamma + module.beta


if __name__ == "__main__":
    B, S = 2, 8
    CHAR_TABLE, WORD_TABLE = 60, 40
    CHAR_DIM, WORD_DIM, HIDDEN = 32, 16, 128

    key = jax.random.PRNGKey(0)
    k_ids_c, k_ids_w, k_params = jax.random.split(key, 3)

    module = CustomEmbeddingPallas(CHAR_TABLE, WORD_TABLE, CHAR_DIM, WORD_DIM,
                                   HIDDEN, use_mix_embedding=True, key=k_params)

    ids_char = jax.random.randint(k_ids_c, (B, S), 0, CHAR_TABLE + 2, jnp.int32)
    ids_word = jax.random.randint(k_ids_w, (B, S), 0, WORD_TABLE + 2, jnp.int32)

    # mix path
    out = jax.block_until_ready(module((ids_char, ids_word)))
    assert out.shape == (B, S, HIDDEN), out.shape
    ref = _reference_mix(module, ids_char, ids_word).reshape(B, S, HIDDEN)
    err = float(jnp.abs(out - ref).max())
    assert jnp.allclose(out, ref, atol=1e-4, rtol=1e-4), err

    # char-only path
    out2 = jax.block_until_ready(module(ids_char))
    assert out2.shape == (B, S, HIDDEN), out2.shape
    ref2 = _reference_char(module, ids_char).reshape(B, S, HIDDEN)
    err2 = float(jnp.abs(out2 - ref2).max())
    assert jnp.allclose(out2, ref2, atol=1e-4, rtol=1e-4), err2

    print("KERNEL_OK")
</pallas_src>

<mosaic_0001>
module attributes {stable_mosaic.version = 11 : i64} {
  func.func @_mix_embed_ln_kernel(%arg0: i32, %arg1: memref<1x2x8xi32, #tpu.memory_space<vmem>>, %arg2: memref<256x256xf32, #tpu.memory_space<vmem>>, %arg3: memref<1x128xf32, #tpu.memory_space<vmem>>, %arg4: memref<1x128xf32, #tpu.memory_space<vmem>>, %arg5: memref<8x128xf32, #tpu.memory_space<vmem>>) attributes {dimension_semantics = [#tpu.dimension_semantics<parallel>], iteration_bounds = array<i64: 2>, scalar_prefetch = 0 : i64, scratch_operands = 0 : i64, tpu.core_type = #tpu.core_type<tc>, window_params = [{transform_indices = @transform_0, window_bounds = array<i64: 1, 2, 8>}, {pipeline_mode = #tpu.pipeline_mode<synchronous>, transform_indices = @transform_1, window_bounds = array<i64: 256, 256>}, {pipeline_mode = #tpu.pipeline_mode<synchronous>, transform_indices = @transform_2, window_bounds = array<i64: 1, 128>}, {pipeline_mode = #tpu.pipeline_mode<synchronous>, transform_indices = @transform_3, window_bounds = array<i64: 1, 128>}, {transform_indices = @transform_4, window_bounds = array<i64: 8, 128>}]} {
    %c0 = arith.constant 0 : index
    %c0_0 = arith.constant 0 : index
    %c0_1 = arith.constant 0 : index
    %0 = vector.load %arg1[%c0, %c0_0, %c0_1] : memref<1x2x8xi32, #tpu.memory_space<vmem>>, vector<1x2x8xi32>
    %1 = vector.extract_strided_slice %0 {offsets = [0, 0, 0], sizes = [1, 1, 8], strides = [1, 1, 1]} : vector<1x2x8xi32> to vector<1x1x8xi32>
    %2 = vector.shape_cast %1 : vector<1x1x8xi32> to vector<8xi32>
    %3 = vector.shape_cast %2 : vector<8xi32> to vector<8x1xi32>
    %4 = vector.extract_strided_slice %0 {offsets = [0, 1, 0], sizes = [1, 1, 8], strides = [1, 1, 1]} : vector<1x2x8xi32> to vector<1x1x8xi32>
    %5 = vector.shape_cast %4 : vector<1x1x8xi32> to vector<8xi32>
    %6 = vector.shape_cast %5 : vector<8xi32> to vector<8x1xi32>
    %c128_i32 = arith.constant 128 : i32
    %7 = vector.broadcast %c128_i32 : i32 to vector<8x1xi32>
    %8 = arith.addi %6, %7 : vector<8x1xi32>
    %9 = tpu.iota {dimensions = array<i32: 1>} : vector<8x256xi32>
    %10 = vector.broadcast %3 : vector<8x1xi32> to vector<8x256xi32>
    %11 = arith.cmpi eq, %9, %10 : vector<8x256xi32>
    %12 = vector.broadcast %8 : vector<8x1xi32> to vector<8x256xi32>
    %13 = arith.cmpi eq, %9, %12 : vector<8x256xi32>
    %14 = arith.ori %11, %13 : vector<8x256xi1>
    %15 = arith.extui %14 : vector<8x256xi1> to vector<8x256xi32>
    %16 = arith.sitofp %15 : vector<8x256xi32> to vector<8x256xf32>
    %c0_2 = arith.constant 0 : index
    %c0_3 = arith.constant 0 : index
    %17 = vector.load %arg2[%c0_2, %c0_3] : memref<256x256xf32, #tpu.memory_space<vmem>>, vector<256x256xf32>
    %cst = arith.constant dense<0.000000e+00> : vector<8x256xf32>
    %18 = tpu.matmul %16, %17, %cst {dimension_numbers = #tpu.dot_dimension_numbers<[1], [0], [0], [1], [0, 0, 1, 1], [], []>, precision = #tpu.contract_precision<fp32>} : vector<8x256xf32>, vector<256x256xf32>, vector<8x256xf32> -> vector<8x256xf32>
    %19 = vector.extract_strided_slice %18 {offsets = [0, 0], sizes = [8, 128], strides = [1, 1]} : vector<8x256xf32> to vector<8x128xf32>
    %20 = vector.extract_strided_slice %18 {offsets = [0, 128], sizes = [8, 1], strides = [1, 1]} : vector<8x256xf32> to vector<8x1xf32>
    %cst_4 = arith.constant 7.812500e-03 : f32
    %21 = vector.broadcast %cst_4 : f32 to vector<8x1xf32>
    %22 = arith.mulf %20, %21 : vector<8x1xf32>
    %23 = vector.broadcast %22 : vector<8x1xf32> to vector<8x128xf32>
    %24 = arith.subf %19, %23 : vector<8x128xf32>
    %25 = arith.mulf %24, %24 : vector<8x128xf32>
    %cst_5 = arith.constant dense<0.000000e+00> : vector<8xf32>
    %26 = vector.multi_reduction <add>, %25, %cst_5 [1] : vector<8x128xf32> to vector<8xf32>
    %27 = vector.shape_cast %26 : vector<8xf32> to vector<8x1xf32>
    %cst_6 = arith.constant 1.280000e+02 : f32
    %28 = vector.broadcast %cst_6 : f32 to vector<8x1xf32>
    %29 = arith.divf %27, %28 : vector<8x1xf32>
    %cst_7 = arith.constant 9.99999974E-6 : f32
    %30 = vector.broadcast %cst_7 : f32 to vector<8x1xf32>
    %31 = arith.addf %29, %30 : vector<8x1xf32>
    %32 = math.rsqrt %31 : vector<8x1xf32>
    %33 = vector.broadcast %32 : vector<8x1xf32> to vector<8x128xf32>
    %34 = arith.mulf %24, %33 : vector<8x128xf32>
    %c0_8 = arith.constant 0 : index
    %c0_9 = arith.constant 0 : index
    %35 = vector.load %arg3[%c0_8, %c0_9] : memref<1x128xf32, #tpu.memory_space<vmem>>, vector<1x128xf32>
    %36 = vector.broadcast %35 : vector<1x128xf32> to vector<8x128xf32>
    %37 = arith.mulf %34, %36 : vector<8x128xf32>
    %c0_10 = arith.constant 0 : index
    %c0_11 = arith.constant 0 : index
    %38 = vector.load %arg4[%c0_10, %c0_11] : memref<1x128xf32, #tpu.memory_space<vmem>>, vector<1x128xf32>
    %39 = vector.broadcast %38 : vector<1x128xf32> to vector<8x128xf32>
    %40 = arith.addf %37, %39 : vector<8x128xf32>
    %c0_12 = arith.constant 0 : index
    %c0_13 = arith.constant 0 : index
    %41 = vector.load %arg5[%c0_12, %c0_13] : memref<8x128xf32, #tpu.memory_space<vmem>>, vector<8x128xf32>
    tpu.vector_store %arg5[%c0_12, %c0_13], %40 {strides = array<i32>} : memref<8x128xf32, #tpu.memory_space<vmem>>, vector<8x128xf32>,
    return
  }
  func.func @transform_0(%arg0: i32) -> (i32, i32, i32) {
    %c0_i32 = arith.constant 0 : i32
    %c0_i32_0 = arith.constant 0 : i32
    %c0_i32_1 = arith.constant 0 : i32
    return %arg0, %c0_i32, %c0_i32_0 : i32, i32, i32
  }
  func.func @transform_1(%arg0: i32) -> (i32, i32) {
    %c0_i32 = arith.constant 0 : i32
    %c0_i32_0 = arith.constant 0 : i32
    %c0_i32_1 = arith.constant 0 : i32
    return %c0_i32, %c0_i32_0 : i32, i32
  }
  func.func @transform_2(%arg0: i32) -> (i32, i32) {
    %c0_i32 = arith.constant 0 : i32
    %c0_i32_0 = arith.constant 0 : i32
    %c0_i32_1 = arith.constant 0 : i32
    return %c0_i32, %c0_i32_0 : i32, i32
  }
  func.func @transform_3(%arg0: i32) -> (i32, i32) {
    %c0_i32 = arith.constant 0 : i32
    %c0_i32_0 = arith.constant 0 : i32
    %c0_i32_1 = arith.constant 0 : i32
    return %c0_i32, %c0_i32_0 : i32, i32
  }
  func.func @transform_4(%arg0: i32) -> (i32, i32) {
    %c0_i32 = arith.constant 0 : i32
    %c0_i32_0 = arith.constant 0 : i32
    return %arg0, %c0_i32 : i32, i32
  }
}

</mosaic_0001>

<bundles_post_ra>
// kernel: tpu_custom_call.1
= control target key start
LH: loop header
LB: loop body
LE: loop exit
PB: predicated region body
PF: predicated region fallthrough
CT: control target
= control target key end

     0   :  { %9 = vsyncpa [#allocation3], 0  ;;  %s3399_s0 = inlined_call_operand.hbm [shape: s32[2,2,8], index: 0, kind: input, shape index: {}]   ;;  %s3400_s1 = inlined_call_operand.hbm [shape: f32[256,256], index: 1, kind: input, shape index: {}]   ;;  %s3401_s2 = inlined_call_operand.vmem [shape: f32[1,128], index: 2, kind: input, shape index: {}]   ;;  %s3402_s3 = inlined_call_operand.vmem [shape: f32[1,128], index: 3, kind: input, shape index: {}]   ;;  %s3403_s4 = inlined_call_operand.hbm [shape: f32[16,128], index: 4, kind: output, shape index: {}]  }
   0x1   :  { %11 = vsyncpa [#allocation3 + $0x1], 0 }
   0x2   :  { %12 = vsyncpa [#allocation6], 0 }
   0x3   :  { %13 = vsyncpa [#allocation4], 0 }
   0x4   :  { %15 = vsyncpa [#allocation4 + $0x1], 0  ;;  %s2378_s15 = smov 0   ;;  %s2380_s16 = smov 0  }
   0x5   :  { %s2382_s17 = smov 0   ;;  %s2384_s18 = smov 0  }
   0x6 LB: > { %s2399_s19 = sadd.s32 4294967295, %s2343_s18   ;;  %s1731_s20 = sadd.s32 4294967294, %s2343_s18   ;;  %s2343_s18 = sphi %s2384_s18, %s3840_s18   ;;  %s2339_s17 = sphi %s2382_s17, %s3839_s17   ;;  %s2335_s16 = sphi %s2380_s16, %s3838_s16   ;;  %s2331_s15 = sphi %s2378_s15, %s3837_s15  }
   0x7   : > { %p41_p0 = scmp.ne.s32.totalorder %s2335_s16, %s2331_s15  ;;  %p3404_p1 = scmp.eq.s32.totalorder %s2399_s19, 0 }
   0x8   : > { %p134_p3 = scmp.eq.s32.totalorder %s1731_s20, 1  ;;  %p1732_p5 = scmp.ge.s32.totalorder %s2343_s18, 1 }
   0x9   : > { %p2408_p4 = por %p3404_p1, %p41_p0  ;;  %p141_p7 = scmp.lt.s32.totalorder %s2343_s18, 3 }
   0xa   : > { %p2413_p6 = por %p134_p3, %p41_p0  ;;  %s2345_s24 = smov [#allocation5]  }
   0xb   : > { %s3502_s21 = scalar_select %p2408_p4, 1, 0 }
   0xc   : > { %s3503_s22 = scalar_select %p2413_p6, 1, 0 }
   0xd   : > { %p2418_p8 = pnand %p1732_p5, %p141_p7  ;;  %s153_s25 = sshll.u32 %s2345_s24, 4  ;;  %s2422_s25 = int_to_ptr.vmem [resolvable:$true] %s153_s25 }
   0xe   : > { %s2434_s27 = sadd.s32 1, %s2343_s18   ;;  %s28_s28 = sadd.s32 1, %s2339_s17 }
   0xf   : > { %s3504_s23 = scalar_select %p2418_p8, 1, 0 }
  0x10   : > { %p2157_p9 = pneg %p2418_p8  ;;  %s25_s29 = ssub.s32 %s2343_s18, %s2434_s27 }
  0x11   : > { %s2215_s6 = scalar_lea.hbm %s3400_s1, 8192 }
  0x12   : > { %p2429_p11 = pnand %p2157_p9, %p3404_p1  ;;  %p2216_p12 = scmp.ne.s32.totalorder %s3400_s1, %s2215_s6 }
  0x13   : > { %p2222_p5 = scmp.lt.u32.totalorder %s2215_s6, %s3400_s1 }
  0x14   : > { %p2217_p13 = pneg %p2429_p11 }
  0x16   : > { %p2218_p0 = pnand %p2217_p13, %p2216_p12 }
  0x18   : > { %p2219_p3 = pneg %p2218_p0 }
  0x1a   : > { %p2224_p7 = pnand %p2222_p5, %p2219_p3 }
  0x1c   : > { %2227 = shalt.err (!%p2224_p7)
}
  0x1d   : > { %s2228_s11 = scalar_lea.vmem %s2422_s25, 8192  ;;  %p2236_p2 = scmp.lt.s32.totalorder %s2422_s25, %s2422_s25 }
  0x1e   : > { %p2229_p9 = scmp.ne.s32.totalorder %s2422_s25, %s2228_s11  ;;  %p2237_p6 = scmp.lt.s32.totalorder %s2228_s11, %s2228_s11 }
  0x20   : > { %p2231_p10 = pnand %p2229_p9, %p2217_p13  ;;  %p2238_p4 = por %p2237_p6, %p2236_p2 }
  0x22   : > { %p2232_p1 = pneg %p2231_p10 }
  0x24   : > { %p2239_p8 = pnand %p2238_p4, %p2232_p1 }
  0x26   : > { %2242 = shalt.err (!%p2239_p8)
}
  0x27   : > { %s2346_s12 = smov 256   ;;  %s2347_s13 = smov 16  }
  0x28   : > { %2160 = dma.hbm_to_vmem [thread:$0]  (!%p2429_p11), %s3400_s1, 8192, %s2422_s25, [#allocation6], %s2346_s12, %s2346_s12, %s2347_s13  }
  0x29   : > { %p26_p2 = scmp.eq.s32.totalorder %s25_s29, 0  ;;  %p35_p1 = scmp.ne.s32.totalorder %s2339_s17, %s2335_s16 }
  0x2a   : > { %p36_p4 = scmp.eq.s32.totalorder %s2343_s18, 0  ;;  %p2170_p6 = scmp.lt.s32.totalorder %s2343_s18, 2 }
  0x2b   : > { %s2465_s24 = scalar_select %p26_p2, %s2339_s17, %s28_s28  }
  0x2c   : > { %p37_p8 = por %p36_p4, %p35_p1  ;;  %p3506_p10 = scmp.eq.s32.totalorder %s2399_s19, 1 }
  0x2d   : > { %s173_s5 = sand.u32 1, %s2339_s17   ;;  %s1736_s6 = sshll.u32 %s2343_s18, 5 }
  0x2e   : > { %p2469_p12 = por %p3506_p10, %p35_p1  ;;  %s1735_s7 = sshll.u32 %s173_s5, 1 }
  0x2f   : > { %s2478_s9 = scalar_lea.hbm %s3399_s0, %s1736_s6  ;;  %s177_s25 = scalar_lea.vmem [#allocation2], %s1735_s7 }
  0x30   : > { %s184_s28 = sshll.u32 %s177_s25, 4  ;;  %p2480_p11 = pnand %p2170_p6, %p37_p8  ;;  %s2484_s28 = int_to_ptr.vmem [resolvable:$true] %s184_s28 }
  0x31   : > { %s174_s10 = scalar_lea.sflag [#allocation3], %s173_s5  ;;  %s2243_s11 = scalar_lea.hbm %s2478_s9, 32 }
  0x32   : > { %p2244_p13 = scmp.ne.s32.totalorder %s2478_s9, %s2243_s11  ;;  %p2245_p0 = pneg %p2480_p11 }
  0x33   : > { %s2248_s14 = scalar_lea.hbm %s3399_s0, 64  ;;  %p2249_p7 = scmp.lt.u32.totalorder %s2478_s9, %s3399_s0 }
  0x34   : > { %p2246_p3 = pnand %p2245_p0, %p2244_p13  ;;  %p2250_p9 = scmp.lt.u32.totalorder %s2248_s14, %s2243_s11 }
  0x35   : > { %p2252_p1 = scmp.lt.u32.totalorder %s2243_s11, %s2478_s9 }
  0x36   : > { %p2247_p5 = pneg %p2246_p3  ;;  %p2251_p2 = por %p2250_p9, %p2249_p7 }
  0x38   : > { %p2253_p4 = por %p2252_p1, %p2251_p2 }
  0x3a   : > { %p2254_p6 = pnand %p2253_p4, %p2247_p5 }
  0x3c   : > { %2257 = shalt.err (!%p2254_p6)
}
  0x3d   : > { %s2258_s5 = scalar_lea.vmem %s2484_s28, 32  ;;  %s2348_s7 = smov [#allocation2]  }
  0x3e   : > { %p2259_p8 = scmp.ne.s32.totalorder %s2484_s28, %s2258_s5  ;;  %s2263_s26 = sshll.u32 %s2348_s7, 4  ;;  %s2264_s26 = int_to_ptr.vmem [resolvable:$false] %s2263_s26 }
  0x3f   : > { %s2265_s8 = scalar_lea.vmem %s2264_s26, 64  ;;  %p2266_p3 = scmp.lt.s32.totalorder %s2484_s28, %s2264_s26 }
  0x40   : > { %p2261_p10 = pnand %p2259_p8, %p2245_p0  ;;  %p2267_p7 = scmp.lt.s32.totalorder %s2265_s8, %s2258_s5 }
  0x42   : > { %p2262_p13 = pneg %p2261_p10  ;;  %p2268_p9 = por %p2267_p7, %p2266_p3 }
  0x44   : > { %p2269_p2 = pnand %p2268_p9, %p2262_p13 }
  0x46   : > { %2272 = shalt.err (!%p2269_p2)
}
  0x47   : > { %2164 = dma.hbm_to_vmem [thread:$0]  (!%p2480_p11), %s2478_s9, 32, %s2484_s28, %s174_s10  }
  0x48   : > { %p3509_p5 = scmp.ne.s32.totalorder %s3504_s23, 0 }
  0x4a   : > { %193 = sbr.rel (%p3509_p5) target bundleno = 882 (0x372), region = 36 }
  0x51   : > { %s2514_s25 = sand.u32 1, %s2335_s16   ;;  %p3510_p0 = scmp.ne.s32.totalorder %s3502_s21, 0 }
  0x52   : > { %s1738_s11 = sshll.u32 %s2514_s25, 1  ;;  %s196_s12 = scalar_lea.sflag [#allocation3], %s2514_s25 }
  0x53   : > { %s199_s13 = scalar_lea.vmem [#allocation2], %s1738_s11 }
  0x54   : > { %2318 = dma.done.wait (%p3510_p0), %s196_s12, 32  }
  0x55   : > { %2320 = vsyncadd (%p3510_p0), %s196_s12, 4294967264  ;;  %p3511_p1 = scmp.eq.s32.totalorder %s2399_s19, 0 }
  0x57   : > { %2322 = dma.done.wait (%p3511_p1), [#allocation6], 8192   ;;  %p3512_p11 = pmov %p3511_p1 }
  0x58   : > { %v3407_v0 = vlaneseq  ;;  %v228_v4 = vld [vmem:[%s199_s13] sm:$0x3]  ;;  %v258_v5 = vld [vmem:[#allocation5 + $0x8] sm:$0xff]  ;;  %v257_v10 = vld [vmem:[#allocation5] sm:$0xff]  ;;  %s1740_s21 = sshll.u32 %s2514_s25, 3  ;;  %s1752_s10 = sshll.u32 %s2399_s19, 7 }
  0x59   : > { %2324 = vsyncadd (%p3512_p11), [#allocation6], 4294959104  ;;  %v2527_v6 = vld [vmem:[#allocation5 + $0x18] sm:$0xff]  ;;  %v321_v8 = vand.u32 4294901760, %v258_v5  ;;  %v259_v11 = vld [vmem:[#allocation5 + $0x10] sm:$0xff]  ;;  %v323_v13 = vand.u32 4294901760, %v257_v10  ;;  %s3355_s7 = scalar_lea.hbm %s3403_s4, %s1752_s10 }
  0x5a   : > { %v230_v1 = vshrl.u32 %v3407_v0, 7  ;;  %v325_v9 = vand.u32 4294901760, %v2527_v6  ;;  %v262_v12 = vld [vmem:[#allocation5 + $0x28] sm:$0xff]  ;;  %v327_v14 = vand.u32 4294901760, %v259_v11  ;;  %v264_v15 = vld [vmem:[#allocation5 + $0x38] sm:$0xff]  ;;  %v261_v17 = vld [vmem:[#allocation5 + $0x20] sm:$0xff] }
  0x5b   : > { %v329_v16 = vand.u32 4294901760, %v262_v12  ;;  %v263_v18 = vld [vmem:[#allocation5 + $0x30] sm:$0xff]  ;;  %v2534_v21 = vsub.f32 %v258_v5, %v321_v8  ;;  %v333_v22 = vand.u32 4294901760, %v264_v15  ;;  %v266_v23 = vld [vmem:[#allocation5 + $0x48] sm:$0xff]  ;;  %v268_v24 = vld [vmem:[#allocation5 + $0x58] sm:$0xff]  ;;  %v2538_v27 = vsub.f32 %v257_v10, %v323_v13  ;;  %s227_s14 = scalar_lea.vmem [#allocation7], %s1740_s21 }
  0x5c   : > { %v238_v2 = vsub.s32 1, %v230_v1  ;;  %v231_v3 = vsub.s32 0, %v230_v1  ;;  %v2532_v20 = vpack.c.bf16 %v325_v9, %v321_v8  ;;  %v265_v25 = vld [vmem:[#allocation5 + $0x40] sm:$0xff]  ;;  %v2536_v26 = vpack.c.bf16 %v327_v14, %v323_v13  ;;  %v267_v30 = vld [vmem:[#allocation5 + $0x50] sm:$0xff]  ;;  %v270_v31 = vld [vmem:[#allocation5 + $0x68] sm:$0xff]  ;;  %s1651_s20 = sshll.u32 %s227_s14, 4  ;;  %s3357_s20 = int_to_ptr.vmem [resolvable:$true] %s1651_s20 }
  0x5d   : > { %v2540_v28 = vsub.f32 %v259_v11, %v327_v14  ;;  %v2542_v29 = vsub.f32 %v262_v12, %v329_v16  ;;  %v2546_v32 = vpack.c.bf16 %v333_v22, %v329_v16  ;;  %v2548_v33 = vsub.f32 %v264_v15, %v333_v22  ;;  %v272_v40 = vld [vmem:[#allocation5 + $0x78] sm:$0xff]  ;;  %v269_v41 = vld [vmem:[#allocation5 + $0x60] sm:$0xff]  ;;  %v271_v46 = vld [vmem:[#allocation5 + $0x70] sm:$0xff]  ;;  %s1638_s26 = scalar_lea.sflag [#allocation4], %s2514_s25  ;;  %s2273_s8 = scalar_lea.vmem %s3357_s20, 128 }
  0x5e   : > { %v239_v7 = vrot.slane %v228_v4, %v238_v2  ;;  %v232_v19 = vrot.slane %v228_v4, %v231_v3  ;;  %3513 = vst [vmem:[#allocation11_spill] sm:$0xff] %v2532_v20  ;;  %3514 = vst [vmem:[#allocation12_spill] sm:$0xff] %v2536_v26  ;;  %1948 = vmatprep.subr.bf16.mxu0 %v2532_v20  ;;  %1756 = vmatprep.subr.bf16.mxu1 %v2532_v20  ;;  %v331_v34 = vand.u32 4294901760, %v261_v17  ;;  %v274_v47 = vld [vmem:[#allocation5 + $0x88] sm:$0xff]  ;;  %v276_v48 = vld [vmem:[#allocation5 + $0x98] sm:$0xff]  ;;  %p2274_p4 = scmp.ne.s32.totalorder %s3357_s20, %s2273_s8  ;;  %s2352_s19 = smov [#allocation7]  }
  0x5f   : > { %3515 = vst [vmem:[#allocation13_spill] sm:$0xff] %v2540_v28  ;;  %3516 = vst [vmem:[#allocation14_spill] sm:$0xff] %v2546_v32  ;;  %v335_v35 = vand.u32 4294901760, %v263_v18  ;;  %1950 = vmatpush1.bf16.msra.mxu0 %v2536_v26  ;;  %1758 = vmatpush1.bf16.msra.mxu1 %v2536_v26  ;;  %v337_v36 = vand.u32 4294901760, %v266_v23  ;;  %v341_v37 = vand.u32 4294901760, %v268_v24  ;;  %v339_v38 = vand.u32 4294901760, %v265_v25 }
  0x60   : > { %241 = vbcast.lane.b32.xlu0 %v239_v7, 256  ;;  %v343_v39 = vand.u32 4294901760, %v267_v30  ;;  %1952 = vmatprep.subr.bf16.mxu0 %v2546_v32  ;;  %v2555_v43 = vsub.f32 %v261_v17, %v331_v34  ;;  %v345_v45 = vand.u32 4294901760, %v270_v31  ;;  %v273_v53 = vld [vmem:[#allocation5 + $0x80] sm:$0xff]  ;;  %v275_v54 = vld [vmem:[#allocation5 + $0x90] sm:$0xff]  ;;  %v349_v57 = vand.u32 4294901760, %v272_v40  ;;  %p2275_p6 = pnand %p2274_p4, %p2469_p12 }
  0x61   : > { %v2553_v42 = vpack.c.bf16 %v335_v35, %v331_v34  ;;  %v2557_v44 = vsub.f32 %v263_v18, %v335_v35  ;;  %1760 = vmatprep.subr.bf16.mxu1 %v2546_v32  ;;  %v2560_v49 = vpack.c.bf16 %v341_v37, %v337_v36  ;;  %v2562_v50 = vsub.f32 %v266_v23, %v337_v36  ;;  %v278_v4 = vld [vmem:[#allocation5 + $0xa8] sm:$0xff]  ;;  %v280_v5 = vld [vmem:[#allocation5 + $0xb8] sm:$0xff]  ;;  %v277_v7 = vld [vmem:[#allocation5 + $0xa0] sm:$0xff]  ;;  %s2277_s11 = sshll.u32 %s2352_s19, 4  ;;  %s2278_s11 = int_to_ptr.vmem [resolvable:$false] %s2277_s11 }
  0x62   : > { %v2564_v51 = vsub.f32 %v268_v24, %v341_v37  ;;  %v2566_v52 = vpack.c.bf16 %v343_v39, %v339_v38  ;;  %v2568_v55 = vsub.f32 %v265_v25, %v339_v38  ;;  %v2570_v56 = vsub.f32 %v267_v30, %v343_v39  ;;  %v279_v13 = vld [vmem:[#allocation5 + $0xb0] sm:$0xff]  ;;  %v282_v14 = vld [vmem:[#allocation5 + $0xc8] sm:$0xff]  ;;  %v284_v15 = vld [vmem:[#allocation5 + $0xd8] sm:$0xff]  ;;  %p2276_p8 = pneg %p2275_p6  ;;  %s2279_s12 = scalar_lea.vmem %s2278_s11, 256 }
  0x63   : > { %3517 = vst [vmem:[#allocation15_spill] sm:$0xff] %v2553_v42  ;;  %3518 = vst [vmem:[#allocation16_spill] sm:$0xff] %v2560_v49  ;;  %v2572_v58 = vsub.f32 %v270_v31, %v345_v45  ;;  %1954 = vmatpush1.bf16.msra.mxu0 %v2553_v42  ;;  %1762 = vmatpush1.bf16.msra.mxu1 %v2553_v42  ;;  %v347_v59 = vand.u32 4294901760, %v269_v41  ;;  %v351_v60 = vand.u32 4294901760, %v271_v46  ;;  %v353_v61 = vand.u32 4294901760, %v274_v47  ;;  %v281_v22 = vld [vmem:[#allocation5 + $0xc0] sm:$0xff]  ;;  %p2280_p10 = scmp.lt.s32.totalorder %s3357_s20, %s2278_s11  ;;  %p2281_p13 = scmp.lt.s32.totalorder %s2279_s12, %s2273_s8 }
  0x64   : > { %234 = vbcast.lane.b32.xlu0 %v232_v19, 256  ;;  %3519 = vst [vmem:[#allocation17_spill] sm:$0xff] %v2566_v52  ;;  %v357_v62 = vand.u32 4294901760, %v276_v48  ;;  %1956 = vmatprep.subr.bf16.mxu0 %v2560_v49  ;;  %v2578_v63 = vpack.c.bf16 %v349_v57, %v345_v45  ;;  %v2580_v1 = vsub.f32 %v272_v40, %v349_v57  ;;  %v355_v2 = vand.u32 4294901760, %v273_v53  ;;  %v283_v35 = vld [vmem:[#allocation5 + $0xd0] sm:$0xff]  ;;  %v286_v36 = vld [vmem:[#allocation5 + $0xe8] sm:$0xff] }
  0x65   : > { %1764 = vmatprep.subr.bf16.mxu1 %v2560_v49  ;;  %v359_v3 = vand.u32 4294901760, %v275_v54  ;;  %v2585_v8 = vsub.f32 %v2527_v6, %v325_v9  ;;  %v2587_v10 = vpack.c.bf16 %v351_v60, %v347_v59  ;;  %v2589_v11 = vsub.f32 %v269_v41, %v347_v59  ;;  %v288_v41 = vld [vmem:[#allocation5 + $0xf8] sm:$0xff]  ;;  %v285_v45 = vld [vmem:[#allocation5 + $0xe0] sm:$0xff]  ;;  %v290_v57 = vld [vmem:[#allocation5 + $0x108] sm:$0xff]  ;;  %p2282_p3 = por %p2281_p13, %p2280_p10 }
  0x66   : > { %3520 = vst [vmem:[#allocation18_spill] sm:$0xff] %v2578_v63  ;;  %v2591_v12 = vsub.f32 %v271_v46, %v351_v60  ;;  %v2593_v16 = vpack.c.bf16 %v357_v62, %v353_v61  ;;  %v2595_v17 = vsub.f32 %v274_v47, %v353_v61  ;;  %v2597_v18 = vsub.f32 %v276_v48, %v357_v62  ;;  %v287_v46 = vld [vmem:[#allocation5 + $0xf0] sm:$0xff]  ;;  %v292_v59 = vld [vmem:[#allocation5 + $0x118] sm:$0xff] }
  0x67   : > { %3521 = vst [vmem:[#allocation19_spill] sm:$0xff] %v2585_v8  ;;  %3522 = vst [vmem:[#allocation20_spill] sm:$0xff] %v2587_v10  ;;  %v2599_v19 = vsub.f32 %v273_v53, %v355_v2  ;;  %1958 = vmatpush1.bf16.msra.mxu0 %v2566_v52  ;;  %1766 = vmatpush1.bf16.msra.mxu1 %v2566_v52  ;;  %v2603_v6 = vsub.f32 %v275_v54, %v359_v3  ;;  %v361_v9 = vand.u32 4294901760, %v278_v4  ;;  %v300_v49 = vld [vmem:[#allocation5 + $0x158] sm:$0xff]  ;;  %p2283_p7 = pnand %p2282_p3, %p2276_p8 }
  0x68   : > { %3523 = vst [vmem:[#allocation21_spill] sm:$0xff] %v2593_v16  ;;  %v365_v23 = vand.u32 4294901760, %v280_v5  ;;  %v363_v24 = vand.u32 4294901760, %v277_v7  ;;  %1960 = vmatprep.subr.bf16.mxu0 %v2578_v63  ;;  %1768 = vmatprep.subr.bf16.mxu1 %v2578_v63  ;;  %v2607_v25 = vpack.c.bf16 %v359_v3, %v355_v2  ;;  %v367_v30 = vand.u32 4294901760, %v279_v13  ;;  %v295_v63 = vld [vmem:[#allocation5 + $0x130] sm:$0xff] }
  0x69   : > { %v369_v31 = vand.u32 4294901760, %v282_v14  ;;  %v373_v34 = vand.u32 4294901760, %v284_v15  ;;  %v2609_v37 = vsub.f32 %v278_v4, %v361_v9  ;;  %v371_v40 = vand.u32 4294901760, %v281_v22 }
  0x6a   : > { %3524 = vst [vmem:[#allocation22_spill] sm:$0xff] %v2607_v25  ;;  %v2611_v38 = vsub.f32 %v280_v5, %v365_v23  ;;  %v2613_v39 = vsub.f32 %v277_v7, %v363_v24  ;;  %v2615_v47 = vpack.c.bf16 %v365_v23, %v361_v9  ;;  %v2617_v48 = vpack.c.bf16 %v367_v30, %v363_v24  ;;  %v291_v24 = vld [vmem:[#allocation5 + $0x110] sm:$0xff] }
  0x6b   : > { %v2619_v53 = vsub.f32 %v279_v13, %v367_v30  ;;  %v2621_v54 = vsub.f32 %v282_v14, %v369_v31  ;;  %1962 = vmatpush1.bf16.msra.mxu0 %v2587_v10  ;;  %1770 = vmatpush1.bf16.msra.mxu1 %v2587_v10  ;;  %v2625_v60 = vsub.f32 %v284_v15, %v373_v34  ;;  %v375_v61 = vand.u32 4294901760, %v283_v35  ;;  %v289_v13 = vld [vmem:[#allocation5 + $0x100] sm:$0xff]  ;;  %v296_v30 = vld [vmem:[#allocation5 + $0x138] sm:$0xff] }
  0x6c   : > { %3525 = vst [vmem:[#allocation23_spill] sm:$0xff] %v2613_v39  ;;  %3526 = vst [vmem:[#allocation24_spill] sm:$0xff] %v2615_v47  ;;  %v2627_v62 = vsub.f32 %v281_v22, %v371_v40  ;;  %v377_v2 = vand.u32 4294901760, %v286_v36  ;;  %1964 = vmatprep.subr.bf16.mxu0 %v2593_v16  ;;  %1772 = vmatprep.subr.bf16.mxu1 %v2593_v16  ;;  %v2631_v3 = vpack.c.bf16 %v373_v34, %v369_v31  ;;  %v294_v22 = vld [vmem:[#allocation5 + $0x128] sm:$0xff]  ;;  %v293_v34 = vld [vmem:[#allocation5 + $0x120] sm:$0xff] }
  0x6d   : > { %3527 = vst [vmem:[#allocation25_spill] sm:$0xff] %v2617_v48  ;;  %3528 = vst [vmem:[#allocation26_spill] sm:$0xff] %v2621_v54  ;;  %v381_v4 = vand.u32 4294901760, %v288_v41  ;;  %v379_v5 = vand.u32 4294901760, %v285_v45  ;;  %v383_v7 = vand.u32 4294901760, %v287_v46  ;;  %v2633_v14 = vsub.f32 %v283_v35, %v375_v61 }
  0x6e   : > { %3529 = vst [vmem:[#allocation27_spill] sm:$0xff] %v2625_v60  ;;  %3530 = vst [vmem:[#allocation28_spill] sm:$0xff] %v2627_v62  ;;  %v2635_v9 = vsub.f32 %v286_v36, %v377_v2  ;;  %v385_v15 = vand.u32 4294901760, %v290_v57  ;;  %v389_v23 = vand.u32 4294901760, %v292_v59  ;;  %v2637_v0 = vpack.c.bf16 %v375_v61, %v371_v40  ;;  %v298_v61 = vld [vmem:[#allocation5 + $0x148] sm:$0xff] }
  0x6f   : > { %3531 = vst [vmem:[#allocation29_spill] sm:$0xff] %v2631_v3  ;;  %3532 = vst [vmem:[#allocation30_spill] sm:$0xff] %v2633_v14  ;;  %v2639_v10 = vpack.c.bf16 %v381_v4, %v377_v2  ;;  %v2641_v16 = vsub.f32 %v288_v41, %v381_v4  ;;  %v2643_v31 = vsub.f32 %v285_v45, %v379_v5  ;;  %1966 = vmatpush1.bf16.msra.mxu0 %v2607_v25 }
  0x70   : > { %3533 = vst [vmem:[#allocation31_spill] sm:$0xff] %v2635_v9  ;;  %3534 = vst [vmem:[#allocation32_spill] sm:$0xff] %v2637_v0  ;;  %1774 = vmatpush1.bf16.msra.mxu1 %v2607_v25  ;;  %v2647_v35 = vpack.c.bf16 %v383_v7, %v379_v5  ;;  %v2649_v36 = vsub.f32 %v287_v46, %v383_v7  ;;  %v2651_v52 = vsub.f32 %v290_v57, %v385_v15  ;;  %v297_v57 = vld [vmem:[#allocation5 + $0x140] sm:$0xff]  ;;  %v299_v25 = vld [vmem:[#allocation5 + $0x150] sm:$0xff] }
  0x71   : > { %3535 = vst [vmem:[#allocation33_spill] sm:$0xff] %v2639_v10  ;;  %3536 = vst [vmem:[#allocation34_spill] sm:$0xff] %v2641_v16  ;;  %v387_v40 = vand.u32 4294901760, %v289_v13  ;;  %1968 = vmatprep.subr.bf16.mxu0 %v2615_v47  ;;  %1776 = vmatprep.subr.bf16.mxu1 %v2615_v47  ;;  %v2655_v41 = vsub.f32 %v292_v59, %v389_v23  ;;  %v391_v45 = vand.u32 4294901760, %v291_v24  ;;  %v393_v2 = vand.u32 4294901760, %v294_v22  ;;  %v302_v47 = vld [vmem:[#allocation5 + $0x168] sm:$0xff] }
  0x72   : > { %3537 = vst [vmem:[#allocation35_spill] sm:$0xff] %v2643_v31  ;;  %3538 = vst [vmem:[#allocation36_spill] sm:$0xff] %v2647_v35  ;;  %v397_v4 = vand.u32 4294901760, %v296_v30  ;;  %v2657_v42 = vpack.c.bf16 %v389_v23, %v385_v15  ;;  %v395_v46 = vand.u32 4294901760, %v293_v34  ;;  %v399_v7 = vand.u32 4294901760, %v295_v63  ;;  %v319_v16 = vld [vmem:[#allocation5 + $0x1f0] sm:$0xff] }
  0x73   : > { %3539 = vst [vmem:[#allocation37_spill] sm:$0xff] %v2649_v36  ;;  %3540 = vst [vmem:[#allocation38_spill] sm:$0xff] %v2651_v52  ;;  %v2659_v5 = vsub.f32 %v289_v13, %v387_v40  ;;  %v2661_v32 = vpack.c.bf16 %v391_v45, %v387_v40  ;;  %v2663_v26 = vsub.f32 %v291_v24, %v391_v45  ;;  %v401_v59 = vand.u32 4294901760, %v298_v61  ;;  %v301_v40 = vld [vmem:[#allocation5 + $0x160] sm:$0xff] }
  0x74   : > { %3541 = vst [vmem:[#allocation39_spill] sm:$0xff] %v2655_v41  ;;  %3542 = vst [vmem:[#allocation40_spill] sm:$0xff] %v2657_v42  ;;  %v2665_v20 = vsub.f32 %v294_v22, %v393_v2  ;;  %v304_v41 = vld [vmem:[#allocation5 + $0x178] sm:$0xff]  ;;  %1970 = vmatpush1.bf16.msra.mxu0 %v2617_v48  ;;  %1778 = vmatpush1.bf16.msra.mxu1 %v2617_v48  ;;  %v2669_v15 = vpack.c.bf16 %v397_v4, %v393_v2  ;;  %v403_v45 = vand.u32 4294901760, %v297_v57 }
  0x75   : > { %3543 = vst [vmem:[#allocation41_spill] sm:$0xff] %v2659_v5  ;;  %3544 = vst [vmem:[#allocation42_spill] sm:$0xff] %v2661_v32  ;;  %v2671_v13 = vsub.f32 %v296_v30, %v397_v4  ;;  %v2673_v23 = vsub.f32 %v293_v34, %v395_v46  ;;  %v405_v5 = vand.u32 4294901760, %v300_v49  ;;  %1972 = vmatprep.subr.bf16.mxu0 %v2631_v3  ;;  %1780 = vmatprep.subr.bf16.mxu1 %v2631_v3  ;;  %v306_v4 = vld [vmem:[#allocation5 + $0x188] sm:$0xff]  ;;  %v307_v3 = vld [vmem:[#allocation5 + $0x190] sm:$0xff] }
  0x76   : > { %3545 = vst [vmem:[#allocation43_spill] sm:$0xff] %v2663_v26  ;;  %3546 = vst [vmem:[#allocation44_spill] sm:$0xff] %v2665_v20  ;;  %v2677_v24 = vsub.f32 %v295_v63, %v399_v7  ;;  %v2679_v22 = vsub.f32 %v298_v61, %v401_v59  ;;  %v407_v20 = vand.u32 4294901760, %v299_v25  ;;  %v303_v26 = vld [vmem:[#allocation5 + $0x170] sm:$0xff]  ;;  %v2681_v48 = vpack.c.bf16 %v399_v7, %v395_v46 }
  0x77   : > { %3547 = vst [vmem:[#allocation45_spill] sm:$0xff] %v2669_v15  ;;  %3548 = vst [vmem:[#allocation46_spill] sm:$0xff] %v2671_v13  ;;  %v2683_v2 = vsub.f32 %v300_v49, %v405_v5  ;;  %v409_v30 = vand.u32 4294901760, %v302_v47  ;;  %v413_v34 = vand.u32 4294901760, %v304_v41  ;;  %v305_v13 = vld [vmem:[#allocation5 + $0x180] sm:$0xff]  ;;  %v2685_v52 = vpack.c.bf16 %v405_v5, %v401_v59 }
  0x78   : > { %3549 = vst [vmem:[#allocation47_spill] sm:$0xff] %v2673_v23  ;;  %3550 = vst [vmem:[#allocation48_spill] sm:$0xff] %v2677_v24  ;;  %v308_v23 = vld [vmem:[#allocation5 + $0x198] sm:$0xff]  ;;  %v2687_v36 = vsub.f32 %v297_v57, %v403_v45  ;;  %v2689_v63 = vsub.f32 %v299_v25, %v407_v20  ;;  %v411_v61 = vand.u32 4294901760, %v301_v40  ;;  %1974 = vmatpush1.bf16.msra.mxu0 %v2637_v0  ;;  %1782 = vmatpush1.bf16.msra.mxu1 %v2637_v0  ;;  %v314_v0 = vld [vmem:[#allocation5 + $0x1c8] sm:$0xff] }
  0x79   : > { %3551 = vst [vmem:[#allocation49_spill] sm:$0xff] %v2679_v22  ;;  %3552 = vst [vmem:[#allocation50_spill] sm:$0xff] %v2681_v48  ;;  %v310_v22 = vld [vmem:[#allocation5 + $0x1a8] sm:$0xff]  ;;  %v2693_v49 = vpack.c.bf16 %v407_v20, %v403_v45  ;;  %v2695_v46 = vsub.f32 %v302_v47, %v409_v30  ;;  %v2697_v7 = vsub.f32 %v304_v41, %v413_v34  ;;  %1976 = vmatprep.subr.bf16.mxu0 %v2639_v10  ;;  %v311_v41 = vld [vmem:[#allocation5 + $0x1b0] sm:$0xff] }
  0x7a   : > { %3553 = vst [vmem:[#allocation51_spill] sm:$0xff] %v2683_v2  ;;  %3554 = vst [vmem:[#allocation52_spill] sm:$0xff] %v2685_v52  ;;  %v415_v2 = vand.u32 4294901760, %v303_v26  ;;  %1784 = vmatprep.subr.bf16.mxu1 %v2639_v10  ;;  %v2701_v25 = vsub.f32 %v301_v40, %v411_v61  ;;  %v417_v5 = vand.u32 4294901760, %v306_v4  ;;  %v421_v57 = vand.u32 4294901760, %v308_v23 }
  0x7b   : > { %3555 = vst [vmem:[#allocation53_spill] sm:$0xff] %v2687_v36  ;;  %3556 = vst [vmem:[#allocation54_spill] sm:$0xff] %v2689_v63  ;;  %v419_v59 = vand.u32 4294901760, %v305_v13  ;;  %v312_v63 = vld [vmem:[#allocation5 + $0x1b8] sm:$0xff]  ;;  %v309_v36 = vld [vmem:[#allocation5 + $0x1a0] sm:$0xff]  ;;  %v2703_v24 = vpack.c.bf16 %v413_v34, %v409_v30  ;;  %v423_v47 = vand.u32 4294901760, %v307_v3 }
  0x7c   : > { %3557 = vst [vmem:[#allocation55_spill] sm:$0xff] %v2693_v49  ;;  %3558 = vst [vmem:[#allocation56_spill] sm:$0xff] %v2695_v46  ;;  %v2705_v20 = vsub.f32 %v303_v26, %v415_v2  ;;  %v425_v45 = vand.u32 4294901760, %v310_v22  ;;  %v2707_v46 = vpack.c.bf16 %v415_v2, %v411_v61  ;;  %v2709_v31 = vsub.f32 %v306_v4, %v417_v5  ;;  %v315_v2 = vld [vmem:[#allocation5 + $0x1d0] sm:$0xff] }
  0x7d   : > { %3559 = vst [vmem:[#allocation57_spill] sm:$0xff] %v2697_v7  ;;  %3560 = vst [vmem:[#allocation58_spill] sm:$0xff] %v2701_v25  ;;  %v316_v7 = vld [vmem:[#allocation5 + $0x1d8] sm:$0xff]  ;;  %v2711_v40 = vsub.f32 %v308_v23, %v421_v57  ;;  %v2713_v10 = vsub.f32 %v305_v13, %v419_v59  ;;  %v313_v25 = vld [vmem:[#allocation5 + $0x1c0] sm:$0xff]  ;;  %1978 = vmatpush1.bf16.msra.mxu0 %v2647_v35  ;;  %1786 = vmatpush1.bf16.msra.mxu1 %v2647_v35  ;;  %v429_v34 = vand.u32 4294901760, %v312_v63 }
  0x7e   : > { %3561 = vst [vmem:[#allocation59_spill] sm:$0xff] %v2703_v24  ;;  %3562 = vst [vmem:[#allocation60_spill] sm:$0xff] %v2705_v20  ;;  %v2717_v26 = vpack.c.bf16 %v421_v57, %v417_v5  ;;  %v2719_v30 = vsub.f32 %v307_v3, %v423_v47  ;;  %v2721_v20 = vsub.f32 %v310_v22, %v425_v45  ;;  %1980 = vmatprep.subr.bf16.mxu0 %v2657_v42  ;;  %v320_v57 = vld [vmem:[#allocation5 + $0x1f8] sm:$0xff]  ;;  %v317_v22 = vld [vmem:[#allocation5 + $0x1e0] sm:$0xff] }
  0x7f   : > { %3563 = vst [vmem:[#allocation61_spill] sm:$0xff] %v2707_v46  ;;  %3564 = vst [vmem:[#allocation62_spill] sm:$0xff] %v2709_v31  ;;  %1788 = vmatprep.subr.bf16.mxu1 %v2657_v42  ;;  %v427_v23 = vand.u32 4294901760, %v309_v36  ;;  %v431_v13 = vand.u32 4294901760, %v311_v41  ;;  %v433_v4 = vand.u32 4294901760, %v314_v0  ;;  %v437_v61 = vand.u32 4294901760, %v316_v7 }
  0x80   : > { %3565 = vst [vmem:[#allocation63_spill] sm:$0xff] %v2711_v40  ;;  %3566 = vst [vmem:[#allocation64_spill] sm:$0xff] %v2713_v10  ;;  %v318_v10 = vld [vmem:[#allocation5 + $0x1e8] sm:$0xff]  ;;  %v2725_v40 = vpack.c.bf16 %v423_v47, %v419_v59  ;;  %v2727_v35 = vpack.c.bf16 %v429_v34, %v425_v45  ;;  %v2729_v5 = vsub.f32 %v312_v63, %v429_v34  ;;  %v435_v3 = vand.u32 4294901760, %v313_v25 }
  0x81   : > { %3567 = vst [vmem:[#allocation65_spill] sm:$0xff] %v2717_v26  ;;  %3568 = vst [vmem:[#allocation66_spill] sm:$0xff] %v2719_v30  ;;  %v2733_v30 = vsub.f32 %v309_v36, %v427_v23  ;;  %v2735_v31 = vsub.f32 %v311_v41, %v431_v13  ;;  %v439_v42 = vand.u32 4294901760, %v315_v2  ;;  %1982 = vmatpush1.bf16.msra.mxu0 %v2661_v32  ;;  %1790 = vmatpush1.bf16.msra.mxu1 %v2661_v32 }
  0x82   : > { %3569 = vst [vmem:[#allocation67_spill] sm:$0xff] %v2721_v20  ;;  %3570 = vst [vmem:[#allocation68_spill] sm:$0xff] %v2725_v40  ;;  %v2731_v20 = vpack.c.bf16 %v431_v13, %v427_v23  ;;  %v2739_v59 = vpack.c.bf16 %v437_v61, %v433_v4  ;;  %v2741_v47 = vsub.f32 %v314_v0, %v433_v4  ;;  %v441_v45 = vand.u32 4294901760, %v318_v10 }
  0x83   : > { %3571 = vst [vmem:[#allocation69_spill] sm:$0xff] %v2727_v35  ;;  %3573 = vst [vmem:[#allocation71_spill] sm:$0xff] %v2733_v30  ;;  %v2743_v63 = vsub.f32 %v316_v7, %v437_v61  ;;  %1984 = vmatprep.subr.bf16.mxu0 %v2669_v15  ;;  %1792 = vmatprep.subr.bf16.mxu1 %v2669_v15  ;;  %v2747_v36 = vsub.f32 %v313_v25, %v435_v3  ;;  %v445_v34 = vand.u32 4294901760, %v320_v57 }
  0x84   : > { %3572 = vst [vmem:[#allocation70_spill] sm:$0xff] %v2731_v20  ;;  %3574 = vst [vmem:[#allocation72_spill] sm:$0xff] %v2735_v31  ;;  %v2749_v41 = vsub.f32 %v315_v2, %v439_v42  ;;  %v443_v23 = vand.u32 4294901760, %v317_v22  ;;  %v2751_v13 = vsub.f32 %v318_v10, %v441_v45  ;;  %v447_v32 = vand.u32 4294901760, %v319_v16 }
  0x85   : > { %3575 = vst [vmem:[#allocation73_spill] sm:$0xff] %v2739_v59  ;;  %3576 = vst [vmem:[#allocation74_spill] sm:$0xff] %v2747_v36  ;;  %v468_v31 = vand.u32 4294901760, %v2534_v21  ;;  %v480_v0 = vand.u32 4294901760, %v2585_v8  ;;  %v2755_v7 = vpack.c.bf16 %v439_v42, %v435_v3  ;;  %v2757_v4 = vsub.f32 %v320_v57, %v445_v34  ;;  %1986 = vmatpush1.bf16.msra.mxu0 %v2681_v48 }
  0x86   : > { %3577 = vst [vmem:[#allocation75_spill] sm:$0xff] %v2751_v13  ;;  %v2759_v61 = vsub.f32 %v317_v22, %v443_v23  ;;  %v474_v25 = vand.u32 4294901760, %v2538_v27  ;;  %1794 = vmatpush1.bf16.msra.mxu1 %v2681_v48  ;;  %v2764_v2 = vpack.c.bf16 %v445_v34, %v441_v45  ;;  %v2766_v10 = vpack.c.bf16 %v447_v32, %v443_v23 }
  0x87   : > { %3578 = vst [vmem:[#allocation76_spill] sm:$0xff] %v2755_v7  ;;  %v2768_v15 = vsub.f32 %v319_v16, %v447_v32  ;;  %v486_v13 = vand.u32 4294901760, %v2540_v28  ;;  %1988 = vmatprep.subr.bf16.mxu0 %v2685_v52  ;;  %1796 = vmatprep.subr.bf16.mxu1 %v2685_v52  ;;  %v2773_v42 = vpack.c.bf16 %v480_v0, %v468_v31  ;;  %v492_v22 = vand.u32 4294901760, %v2542_v29 }
  0x88   : > { %3579 = vst [vmem:[#allocation77_spill] sm:$0xff] %v2764_v2  ;;  %3580 = vst [vmem:[#allocation78_spill] sm:$0xff] %v2766_v10  ;;  %v469_v3 = vsub.f32 %v2534_v21, %v468_v31  ;;  %v481_v57 = vsub.f32 %v2585_v8, %v480_v0  ;;  %v504_v34 = vand.u32 4294901760, %v2548_v33  ;;  %v475_v32 = vsub.f32 %v2538_v27, %v474_v25 }
  0x89   : > { %3581 = vst [vmem:[#allocation79_spill] sm:$0xff] %v2768_v15  ;;  %v2778_v45 = vpack.c.bf16 %v486_v13, %v474_v25  ;;  %v487_v16 = vsub.f32 %v2540_v28, %v486_v13  ;;  %v498_v52 = vand.u32 4294901760, %v2555_v43  ;;  %v510_v15 = vand.u32 4294901760, %v2557_v44  ;;  %1990 = vmatpush1.bf16.msra.mxu0 %v2693_v49 }
  0x8a   : > { %v470_v23 = vand.u32 4294901760, %v469_v3  ;;  %v482_v48 = vand.u32 4294901760, %v481_v57  ;;  %1798 = vmatpush1.bf16.msra.mxu1 %v2693_v49  ;;  %v2787_v31 = vpack.c.bf16 %v504_v34, %v492_v22  ;;  %v476_v0 = vand.u32 4294901760, %v475_v32  ;;  %1992 = vmatprep.subr.bf16.mxu0 %v2703_v24 }
  0x8b   : > { %3582 = vst [vmem:[#allocation80_spill] sm:$0xff] %v2778_v45  ;;  %v488_v45 = vand.u32 4294901760, %v487_v16  ;;  %v493_v8 = vsub.f32 %v2542_v29, %v492_v22  ;;  %1800 = vmatprep.subr.bf16.mxu1 %v2703_v24  ;;  %v2794_v25 = vpack.c.bf16 %v510_v15, %v498_v52  ;;  %v505_v3 = vsub.f32 %v2548_v33, %v504_v34 }
  0x8c   : > { %3583 = vst [vmem:[#allocation81_spill] sm:$0xff] %v2787_v31  ;;  %v2792_v13 = vpack.c.bf16 %v482_v48, %v470_v23  ;;  %v516_v57 = vand.u32 4294901760, %v2562_v50  ;;  %v528_v32 = vand.u32 4294901760, %v2564_v51  ;;  %v499_v16 = vsub.f32 %v2555_v43, %v498_v52 }
  0x8d   : > { %3584 = vst [vmem:[#allocation82_spill] sm:$0xff] %v2794_v25  ;;  %v2798_v28 = vpack.c.bf16 %v488_v45, %v476_v0  ;;  %v494_v49 = vand.u32 4294901760, %v493_v8  ;;  %v506_v22 = vand.u32 4294901760, %v505_v3  ;;  %v511_v31 = vsub.f32 %v2557_v44, %v510_v15  ;;  %1994 = vmatpush1.bf16.msra.mxu0 %v2707_v46 }
  0x8e   : > { %v522_v24 = vand.u32 4294901760, %v2568_v55  ;;  %v534_v48 = vand.u32 4294901760, %v2570_v56  ;;  %1802 = vmatpush1.bf16.msra.mxu1 %v2707_v46  ;;  %v2807_v34 = vpack.c.bf16 %v528_v32, %v516_v57  ;;  %v500_v45 = vand.u32 4294901760, %v499_v16  ;;  %1996 = vmatprep.subr.bf16.mxu0 %v2717_v26 }
  0x8f   : > { %3585 = vst [vmem:[#allocation83_spill] sm:$0xff] %v2798_v28  ;;  %v517_v8 = vsub.f32 %v2562_v50, %v516_v57  ;;  %v529_v23 = vsub.f32 %v2564_v51, %v528_v32  ;;  %1804 = vmatprep.subr.bf16.mxu1 %v2717_v26  ;;  %v2813_v52 = vpack.c.bf16 %v506_v22, %v494_v49  ;;  %v512_v15 = vand.u32 4294901760, %v511_v31 }
  0x90   : > { %3586 = vst [vmem:[#allocation84_spill] sm:$0xff] %v2807_v34  ;;  %v2815_v0 = vpack.c.bf16 %v534_v48, %v522_v24  ;;  %v540_v3 = vand.u32 4294901760, %v2572_v58  ;;  %v552_v34 = vand.u32 4294901760, %v2580_v1  ;;  %v523_v16 = vsub.f32 %v2568_v55, %v522_v24 }
  0x91   : > { %3587 = vst [vmem:[#allocation85_spill] sm:$0xff] %v2813_v52  ;;  %v518_v25 = vand.u32 4294901760, %v517_v8  ;;  %v530_v46 = vand.u32 4294901760, %v529_v23  ;;  %v2820_v57 = vpack.c.bf16 %v512_v15, %v500_v45  ;;  %v535_v32 = vsub.f32 %v2570_v56, %v534_v48  ;;  %1998 = vmatpush1.bf16.msra.mxu0 %v2725_v40 }
  0x92   : > { %3588 = vst [vmem:[#allocation86_spill] sm:$0xff] %v2815_v0  ;;  %v546_v28 = vand.u32 4294901760, %v2589_v11  ;;  %v558_v49 = vand.u32 4294901760, %v2591_v12  ;;  %1806 = vmatpush1.bf16.msra.mxu1 %v2725_v40  ;;  %v2829_v22 = vpack.c.bf16 %v552_v34, %v540_v3  ;;  %v524_v8 = vand.u32 4294901760, %v523_v16  ;;  %2000 = vmatprep.subr.bf16.mxu0 %v2727_v35  ;;  %v3621_v0 = vld [vmem:[#allocation46_spill] sm:$0xff] }
  0x93   : > { %3589 = vst [vmem:[#allocation87_spill] sm:$0xff] %v2820_v57  ;;  %v2827_v31 = vpack.c.bf16 %v530_v46, %v518_v25  ;;  %v541_v23 = vsub.f32 %v2572_v58, %v540_v3  ;;  %1808 = vmatprep.subr.bf16.mxu1 %v2727_v35  ;;  %v536_v24 = vand.u32 4294901760, %v535_v32  ;;  %v553_v45 = vsub.f32 %v2580_v1, %v552_v34 }
  0x94   : > { %3591 = vst [vmem:[#allocation89_spill] sm:$0xff] %v2829_v22  ;;  %v2834_v48 = vpack.c.bf16 %v558_v49, %v546_v28  ;;  %v564_v15 = vand.u32 4294901760, %v2595_v17  ;;  %v576_v46 = vand.u32 4294901760, %v2597_v18  ;;  %v547_v25 = vsub.f32 %v2589_v11, %v546_v28 }
  0x95   : > { %3590 = vst [vmem:[#allocation88_spill] sm:$0xff] %v2827_v31  ;;  %v542_v26 = vand.u32 4294901760, %v541_v23  ;;  %v559_v16 = vsub.f32 %v2591_v12, %v558_v49  ;;  %v2841_v40 = vpack.c.bf16 %v536_v24, %v524_v8  ;;  %v554_v3 = vand.u32 4294901760, %v553_v45  ;;  %2002 = vmatpush1.bf16.msra.mxu0 %v2731_v20 }
  0x96   : > { %3592 = vst [vmem:[#allocation90_spill] sm:$0xff] %v2834_v48  ;;  %v570_v22 = vand.u32 4294901760, %v2599_v19  ;;  %v582_v32 = vand.u32 4294901760, %v2603_v6  ;;  %1810 = vmatpush1.bf16.msra.mxu1 %v2731_v20  ;;  %v2847_v34 = vpack.c.bf16 %v576_v46, %v564_v15  ;;  %v548_v23 = vand.u32 4294901760, %v547_v25  ;;  %2004 = vmatprep.subr.bf16.mxu0 %v2739_v59 }
  0x97   : > { %3593 = vst [vmem:[#allocation91_spill] sm:$0xff] %v2841_v40  ;;  %v560_v35 = vand.u32 4294901760, %v559_v16  ;;  %v565_v48 = vsub.f32 %v2595_v17, %v564_v15  ;;  %1812 = vmatprep.subr.bf16.mxu1 %v2739_v59  ;;  %v2852_v28 = vpack.c.bf16 %v554_v3, %v542_v26  ;;  %v577_v8 = vsub.f32 %v2597_v18, %v576_v46 }
  0x98   : > { %3594 = vst [vmem:[#allocation92_spill] sm:$0xff] %v2847_v34  ;;  %v2854_v49 = vpack.c.bf16 %v582_v32, %v570_v22  ;;  %v588_v24 = vand.u32 4294901760, %v2609_v37  ;;  %v600_v25 = vand.u32 4294901760, %v2611_v38  ;;  %v571_v16 = vsub.f32 %v2599_v19, %v570_v22 }
  0x99   : > { %3595 = vst [vmem:[#allocation93_spill] sm:$0xff] %v2852_v28  ;;  %v2858_v45 = vpack.c.bf16 %v560_v35, %v548_v23  ;;  %v566_v20 = vand.u32 4294901760, %v565_v48  ;;  %v578_v15 = vand.u32 4294901760, %v577_v8  ;;  %v583_v34 = vsub.f32 %v2603_v6, %v582_v32  ;;  %2006 = vmatpush1.bf16.msra.mxu0 %v2755_v7 }
  0x9a   : > { %3596 = vst [vmem:[#allocation94_spill] sm:$0xff] %v2854_v49  ;;  %v594_v59 = vand.u32 4294901760, %v2613_v39  ;;  %v606_v26 = vand.u32 4294901760, %v2619_v53  ;;  %1814 = vmatpush1.bf16.msra.mxu1 %v2755_v7  ;;  %v2867_v46 = vpack.c.bf16 %v600_v25, %v588_v24  ;;  %v572_v35 = vand.u32 4294901760, %v571_v16  ;;  %2008 = vmatprep.subr.bf16.mxu0 %v2764_v2 }
  0x9b   : > { %3597 = vst [vmem:[#allocation95_spill] sm:$0xff] %v2858_v45  ;;  %v589_v48 = vsub.f32 %v2609_v37, %v588_v24  ;;  %v601_v3 = vsub.f32 %v2611_v38, %v600_v25  ;;  %1816 = vmatprep.subr.bf16.mxu1 %v2764_v2  ;;  %v2873_v22 = vpack.c.bf16 %v578_v15, %v566_v20  ;;  %v584_v32 = vand.u32 4294901760, %v583_v34 }
  0x9c   : > { %3598 = vst [vmem:[#allocation96_spill] sm:$0xff] %v2867_v46  ;;  %v2875_v23 = vpack.c.bf16 %v606_v26, %v594_v59  ;;  %v612_v8 = vand.u32 4294901760, %v2621_v54  ;;  %v624_v46 = vand.u32 4294901760, %v2625_v60  ;;  %v595_v16 = vsub.f32 %v2613_v39, %v594_v59  ;;  %v3676_v39 = vld [vmem:[#allocation47_spill] sm:$0xff] }
  0x9d   : > { %3599 = vst [vmem:[#allocation97_spill] sm:$0xff] %v2873_v22  ;;  %v590_v49 = vand.u32 4294901760, %v589_v48  ;;  %v602_v7 = vand.u32 4294901760, %v601_v3  ;;  %v2880_v24 = vpack.c.bf16 %v584_v32, %v572_v35  ;;  %v607_v25 = vsub.f32 %v2619_v53, %v606_v26  ;;  %2010 = vmatpush1.bf16.msra.mxu0 %v2766_v10 }
  0x9e   : > { %3600 = vst [vmem:[#allocation98_spill] sm:$0xff] %v2875_v23  ;;  %v618_v45 = vand.u32 4294901760, %v2627_v62  ;;  %v630_v20 = vand.u32 4294901760, %v2633_v14  ;;  %1818 = vmatpush1.bf16.msra.mxu1 %v2766_v10  ;;  %v2889_v15 = vpack.c.bf16 %v624_v46, %v612_v8  ;;  %v596_v48 = vand.u32 4294901760, %v595_v16  ;;  %2012 = vmatprep.subr.bf16.mxu0 %v2773_v42  ;;  %v3605_v10 = vld [vmem:[#allocation34_spill] sm:$0xff]  ;;  %v3607_v42 = vld [vmem:[#allocation35_spill] sm:$0xff] }
  0x9f   : > { %3601 = vst [vmem:[#allocation99_spill] sm:$0xff] %v2880_v24  ;;  %v2887_v34 = vpack.c.bf16 %v602_v7, %v590_v49  ;;  %v613_v3 = vsub.f32 %v2621_v54, %v612_v8  ;;  %1820 = vmatprep.subr.bf16.mxu1 %v2792_v13  ;;  %v608_v59 = vand.u32 4294901760, %v607_v25  ;;  %v625_v35 = vsub.f32 %v2625_v60, %v624_v46  ;;  %v3608_v13 = vld [vmem:[#allocation37_spill] sm:$0xff] }
  0xa0   : > { %3603 = vst [vmem:[#allocation101_spill] sm:$0xff] %v2889_v15  ;;  %v2894_v26 = vpack.c.bf16 %v630_v20, %v618_v45  ;;  %v636_v32 = vand.u32 4294901760, %v2635_v9  ;;  %v648_v7 = vand.u32 4294901760, %v3605_v10  ;;  %v619_v49 = vsub.f32 %v2627_v62, %v618_v45 }
  0xa1   : > { %3602 = vst [vmem:[#allocation100_spill] sm:$0xff] %v2887_v34  ;;  %v614_v2 = vand.u32 4294901760, %v613_v3  ;;  %v631_v16 = vsub.f32 %v2633_v14, %v630_v20  ;;  %v2901_v15 = vpack.c.bf16 %v608_v59, %v596_v48  ;;  %v626_v8 = vand.u32 4294901760, %v625_v35  ;;  %v3612_v20 = vld [vmem:[#allocation38_spill] sm:$0xff]  ;;  %v3680_v14 = vld [vmem:[#allocation53_spill] sm:$0xff] }
  0xa2   : > { %3604 = vst [vmem:[#allocation102_spill] sm:$0xff] %v2894_v26  ;;  %v642_v34 = vand.u32 4294901760, %v3607_v42  ;;  %v654_v25 = vand.u32 4294901760, %v3608_v13  ;;  %v2905_v23 = vpack.c.bf16 %v648_v7, %v636_v32  ;;  %v620_v26 = vand.u32 4294901760, %v619_v49 }
  0xa3   : > { %3606 = vst [vmem:[#allocation34_spill] sm:$0xff] %v2901_v15  ;;  %v632_v46 = vand.u32 4294901760, %v631_v16  ;;  %v637_v24 = vsub.f32 %v2635_v9, %v636_v32  ;;  %v2908_v3 = vpack.c.bf16 %v626_v8, %v614_v2  ;;  %v649_v45 = vsub.f32 %v3605_v10, %v648_v7  ;;  %v3614_v15 = vld [vmem:[#allocation39_spill] sm:$0xff]  ;;  %v3615_v16 = vld [vmem:[#allocation41_spill] sm:$0xff] }
  0xa4   : > { %3609 = vst [vmem:[#allocation35_spill] sm:$0xff] %v2905_v23  ;;  %v2910_v22 = vpack.c.bf16 %v654_v25, %v642_v34  ;;  %v660_v48 = vand.u32 4294901760, %v3612_v20  ;;  %v672_v28 = vand.u32 4294901760, %v3614_v15  ;;  %v643_v40 = vsub.f32 %v3607_v42, %v642_v34  ;;  %v3616_v2 = vld [vmem:[#allocation43_spill] sm:$0xff]  ;;  %v3620_v34 = vld [vmem:[#allocation44_spill] sm:$0xff] }
  0xa5   : > { %3610 = vst [vmem:[#allocation103_spill] sm:$0xff] %v2908_v3  ;;  %v2914_v59 = vpack.c.bf16 %v632_v46, %v620_v26  ;;  %v638_v35 = vand.u32 4294901760, %v637_v24  ;;  %v650_v23 = vand.u32 4294901760, %v649_v45  ;;  %v655_v49 = vsub.f32 %v3608_v13, %v654_v25 }
  0xa6   : > { %3611 = vst [vmem:[#allocation104_spill] sm:$0xff] %v2910_v22  ;;  %v666_v32 = vand.u32 4294901760, %v3615_v16  ;;  %v678_v8 = vand.u32 4294901760, %v3616_v2  ;;  %v2921_v3 = vpack.c.bf16 %v672_v28, %v660_v48  ;;  %v644_v22 = vand.u32 4294901760, %v643_v40 }
  0xa7   : > { %3613 = vst [vmem:[#allocation105_spill] sm:$0xff] %v2914_v59  ;;  %v661_v7 = vsub.f32 %v3612_v20, %v660_v48  ;;  %v673_v26 = vsub.f32 %v3614_v15, %v672_v28  ;;  %v2925_v46 = vpack.c.bf16 %v650_v23, %v638_v35  ;;  %v656_v24 = vand.u32 4294901760, %v655_v49  ;;  %v3623_v48 = vld [vmem:[#allocation47_spill] sm:$0xff]  ;;  %v3624_v28 = vld [vmem:[#allocation48_spill] sm:$0xff] }
  0xa8   : > { %3617 = vst [vmem:[#allocation106_spill] sm:$0xff] %v2921_v3  ;;  %v2927_v59 = vpack.c.bf16 %v678_v8, %v666_v32  ;;  %v684_v45 = vand.u32 4294901760, %v3620_v34  ;;  %v696_v57 = vand.u32 4294901760, %v3621_v0  ;;  %v667_v52 = vsub.f32 %v3615_v16, %v666_v32 }
  0xa9   : > { %3618 = vst [vmem:[#allocation107_spill] sm:$0xff] %v2925_v46  ;;  %v662_v31 = vand.u32 4294901760, %v661_v7  ;;  %v674_v25 = vand.u32 4294901760, %v673_v26  ;;  %v2932_v13 = vpack.c.bf16 %v656_v24, %v644_v22  ;;  %v679_v40 = vsub.f32 %v3616_v2, %v678_v8  ;;  %v3628_v22 = vld [vmem:[#allocation49_spill] sm:$0xff]  ;;  %v3629_v8 = vld [vmem:[#allocation51_spill] sm:$0xff] }
  0xaa   : > { %3619 = vst [vmem:[#allocation108_spill] sm:$0xff] %v2927_v59  ;;  %v690_v3 = vand.u32 4294901760, %v3623_v48  ;;  %v702_v23 = vand.u32 4294901760, %v3624_v28  ;;  %v2939_v49 = vpack.c.bf16 %v696_v57, %v684_v45  ;;  %v668_v59 = vand.u32 4294901760, %v667_v52  ;;  %v3631_v52 = vld [vmem:[#allocation53_spill] sm:$0xff] }
  0xab   : > { %3622 = vst [vmem:[#allocation109_spill] sm:$0xff] %v2932_v13  ;;  %v2937_v35 = vpack.c.bf16 %v674_v25, %v662_v31  ;;  %v685_v7 = vsub.f32 %v3620_v34, %v684_v45  ;;  %v680_v26 = vand.u32 4294901760, %v679_v40  ;;  %v697_v32 = vsub.f32 %v3621_v0, %v696_v57  ;;  %v3632_v45 = vld [vmem:[#allocation54_spill] sm:$0xff] }
  0xac   : > { %3626 = vst [vmem:[#allocation111_spill] sm:$0xff] %v2939_v49  ;;  %v2942_v46 = vpack.c.bf16 %v702_v23, %v690_v3  ;;  %v708_v24 = vand.u32 4294901760, %v3628_v22  ;;  %v720_v2 = vand.u32 4294901760, %v3629_v8  ;;  %v691_v16 = vsub.f32 %v3623_v48, %v690_v3 }
  0xad   : > { %3625 = vst [vmem:[#allocation110_spill] sm:$0xff] %v2937_v35  ;;  %v686_v13 = vand.u32 4294901760, %v685_v7  ;;  %v703_v31 = vsub.f32 %v3624_v28, %v702_v23  ;;  %v2949_v25 = vpack.c.bf16 %v680_v26, %v668_v59  ;;  %v698_v49 = vand.u32 4294901760, %v697_v32  ;;  %v3636_v23 = vld [vmem:[#allocation56_spill] sm:$0xff] }
  0xae   : > { %3627 = vst [vmem:[#allocation112_spill] sm:$0xff] %v2942_v46  ;;  %v714_v35 = vand.u32 4294901760, %v3631_v52  ;;  %v726_v40 = vand.u32 4294901760, %v3632_v45  ;;  %v2953_v34 = vpack.c.bf16 %v720_v2, %v708_v24  ;;  %v692_v46 = vand.u32 4294901760, %v691_v16 }
  0xaf   : > { %3630 = vst [vmem:[#allocation113_spill] sm:$0xff] %v2949_v25  ;;  %v704_v57 = vand.u32 4294901760, %v703_v31  ;;  %v709_v0 = vsub.f32 %v3628_v22, %v708_v24  ;;  %v2956_v7 = vpack.c.bf16 %v698_v49, %v686_v13  ;;  %v721_v3 = vsub.f32 %v3629_v8, %v720_v2  ;;  %v3638_v25 = vld [vmem:[#allocation57_spill] sm:$0xff]  ;;  %v3639_v31 = vld [vmem:[#allocation58_spill] sm:$0xff]  ;;  %v3640_v13 = vld [vmem:[#allocation60_spill] sm:$0xff] }
  0xb0   : > { %3633 = vst [vmem:[#allocation114_spill] sm:$0xff] %v2953_v34  ;;  %v2958_v15 = vpack.c.bf16 %v726_v40, %v714_v35  ;;  %v732_v59 = vand.u32 4294901760, %v3636_v23  ;;  %v744_v28 = vand.u32 4294901760, %v3638_v25  ;;  %v715_v48 = vsub.f32 %v3631_v52, %v714_v35  ;;  %v3644_v35 = vld [vmem:[#allocation62_spill] sm:$0xff] }
  0xb1   : > { %3634 = vst [vmem:[#allocation115_spill] sm:$0xff] %v2956_v7  ;;  %v2962_v26 = vpack.c.bf16 %v704_v57, %v692_v46  ;;  %v710_v32 = vand.u32 4294901760, %v709_v0  ;;  %v722_v34 = vand.u32 4294901760, %v721_v3  ;;  %v727_v16 = vsub.f32 %v3632_v45, %v726_v40  ;;  %v3645_v45 = vld [vmem:[#allocation63_spill] sm:$0xff] }
  0xb2   : > { %3635 = vst [vmem:[#allocation116_spill] sm:$0xff] %v2958_v15  ;;  %v738_v24 = vand.u32 4294901760, %v3639_v31  ;;  %v750_v49 = vand.u32 4294901760, %v3640_v13  ;;  %v2969_v7 = vpack.c.bf16 %v744_v28, %v732_v59  ;;  %v716_v15 = vand.u32 4294901760, %v715_v48 }
  0xb3   : > { %3637 = vst [vmem:[#allocation56_spill] sm:$0xff] %v2962_v26  ;;  %v733_v2 = vsub.f32 %v3636_v23, %v732_v59  ;;  %v745_v46 = vsub.f32 %v3638_v25, %v744_v28  ;;  %v2973_v57 = vpack.c.bf16 %v722_v34, %v710_v32  ;;  %v728_v0 = vand.u32 4294901760, %v727_v16  ;;  %v3647_v59 = vld [vmem:[#allocation64_spill] sm:$0xff]  ;;  %v3648_v28 = vld [vmem:[#allocation66_spill] sm:$0xff] }
  0xb4   : > { %3641 = vst [vmem:[#allocation57_spill] sm:$0xff] %v2969_v7  ;;  %v2975_v26 = vpack.c.bf16 %v750_v49, %v738_v24  ;;  %v756_v3 = vand.u32 4294901760, %v3644_v35  ;;  %v768_v8 = vand.u32 4294901760, %v3645_v45  ;;  %v739_v22 = vsub.f32 %v3639_v31, %v738_v24 }
  0xb5   : > { %3642 = vst [vmem:[#allocation117_spill] sm:$0xff] %v2973_v57  ;;  %v734_v52 = vand.u32 4294901760, %v733_v2  ;;  %v746_v40 = vand.u32 4294901760, %v745_v46  ;;  %v2980_v20 = vpack.c.bf16 %v728_v0, %v716_v15  ;;  %v751_v48 = vsub.f32 %v3640_v13, %v750_v49  ;;  %v3652_v15 = vld [vmem:[#allocation67_spill] sm:$0xff] }
  0xb6   : > { %3643 = vst [vmem:[#allocation118_spill] sm:$0xff] %v2975_v26  ;;  %v762_v7 = vand.u32 4294901760, %v3647_v59  ;;  %v774_v34 = vand.u32 4294901760, %v3648_v28  ;;  %v2987_v16 = vpack.c.bf16 %v768_v8, %v756_v3  ;;  %v740_v26 = vand.u32 4294901760, %v739_v22 }
  0xb7   : > { %3646 = vst [vmem:[#allocation119_spill] sm:$0xff] %v2980_v20  ;;  %v2985_v32 = vpack.c.bf16 %v746_v40, %v734_v52  ;;  %v757_v2 = vsub.f32 %v3644_v35, %v756_v3  ;;  %v752_v46 = vand.u32 4294901760, %v751_v48  ;;  %v769_v24 = vsub.f32 %v3645_v45, %v768_v8  ;;  %v3654_v3 = vld [vmem:[#allocation72_spill] sm:$0xff] }
  0xb8   : > { %3650 = vst [vmem:[#allocation66_spill] sm:$0xff] %v2987_v16  ;;  %v2990_v57 = vpack.c.bf16 %v774_v34, %v762_v7  ;;  %v780_v0 = vand.u32 4294901760, %v3652_v15  ;;  %v792_v49 = vand.u32 4294901760, %v2729_v5  ;;  %v763_v13 = vsub.f32 %v3647_v59, %v762_v7 }
  0xb9   : > { %3649 = vst [vmem:[#allocation64_spill] sm:$0xff] %v2985_v32  ;;  %v758_v20 = vand.u32 4294901760, %v757_v2  ;;  %v775_v52 = vsub.f32 %v3648_v28, %v774_v34  ;;  %v2997_v40 = vpack.c.bf16 %v752_v46, %v740_v26  ;;  %v770_v16 = vand.u32 4294901760, %v769_v24 }
  0xba   : > { %3651 = vst [vmem:[#allocation120_spill] sm:$0xff] %v2990_v57  ;;  %v786_v22 = vand.u32 4294901760, %v2733_v30  ;;  %v798_v48 = vand.u32 4294901760, %v3654_v3  ;;  %v3001_v32 = vpack.c.bf16 %v792_v49, %v780_v0  ;;  %v764_v57 = vand.u32 4294901760, %v763_v13 }
  0xbb   : > { %3653 = vst [vmem:[#allocation121_spill] sm:$0xff] %v2997_v40  ;;  %v776_v8 = vand.u32 4294901760, %v775_v52  ;;  %v781_v45 = vsub.f32 %v3652_v15, %v780_v0  ;;  %v3004_v2 = vpack.c.bf16 %v770_v16, %v758_v20  ;;  %v793_v7 = vsub.f32 %v2729_v5, %v792_v49  ;;  %v3695_v15 = vld [vmem:[#allocation83_spill] sm:$0xff] }
  0xbc   : > { %3655 = vst [vmem:[#allocation122_spill] sm:$0xff] %v3001_v32  ;;  %v3006_v35 = vpack.c.bf16 %v798_v48, %v786_v22  ;;  %v804_v26 = vand.u32 4294901760, %v2741_v47  ;;  %v816_v24 = vand.u32 4294901760, %v2743_v63  ;;  %v787_v40 = vsub.f32 %v2733_v30, %v786_v22  ;;  %v3662_v22 = vld [vmem:[#allocation75_spill] sm:$0xff] }
  0xbd   : > { %3656 = vst [vmem:[#allocation123_spill] sm:$0xff] %v3004_v2  ;;  %v3010_v34 = vpack.c.bf16 %v776_v8, %v764_v57  ;;  %v782_v46 = vand.u32 4294901760, %v781_v45  ;;  %v794_v32 = vand.u32 4294901760, %v793_v7  ;;  %v799_v13 = vsub.f32 %v3654_v3, %v798_v48 }
  0xbe   : > { %3657 = vst [vmem:[#allocation124_spill] sm:$0xff] %v3006_v35  ;;  %v810_v0 = vand.u32 4294901760, %v2747_v36  ;;  %v822_v20 = vand.u32 4294901760, %v2749_v41  ;;  %v3017_v16 = vpack.c.bf16 %v816_v24, %v804_v26  ;;  %v788_v52 = vand.u32 4294901760, %v787_v40 }
  0xbf   : > { %3658 = vst [vmem:[#allocation125_spill] sm:$0xff] %v3010_v34  ;;  %v805_v49 = vsub.f32 %v2741_v47, %v804_v26  ;;  %v817_v57 = vsub.f32 %v2743_v63, %v816_v24  ;;  %v3021_v8 = vpack.c.bf16 %v794_v32, %v782_v46  ;;  %v800_v45 = vand.u32 4294901760, %v799_v13  ;;  %v3664_v24 = vld [vmem:[#allocation79_spill] sm:$0xff] }
  0xc0   : > { %3659 = vst [vmem:[#allocation126_spill] sm:$0xff] %v3017_v16  ;;  %v3023_v35 = vpack.c.bf16 %v822_v20, %v810_v0  ;;  %v828_v7 = vand.u32 4294901760, %v3662_v22  ;;  %v840_v2 = vand.u32 4294901760, %v2757_v4  ;;  %v811_v3 = vsub.f32 %v2747_v36, %v810_v0 }
  0xc1   : > { %3660 = vst [vmem:[#allocation127_spill] sm:$0xff] %v3021_v8  ;;  %v806_v34 = vand.u32 4294901760, %v805_v49  ;;  %v818_v48 = vand.u32 4294901760, %v817_v57  ;;  %v3028_v30 = vpack.c.bf16 %v800_v45, %v788_v52  ;;  %v823_v40 = vsub.f32 %v2749_v41, %v822_v20  ;;  %v3685_v8 = vld [vmem:[#allocation63_spill] sm:$0xff] }
  0xc2   : > { %3661 = vst [vmem:[#allocation128_spill] sm:$0xff] %v3023_v35  ;;  %v834_v26 = vand.u32 4294901760, %v2759_v61  ;;  %v846_v32 = vand.u32 4294901760, %v3664_v24  ;;  %v3035_v13 = vpack.c.bf16 %v840_v2, %v828_v7  ;;  %v812_v35 = vand.u32 4294901760, %v811_v3 }
  0xc3   : > { %3663 = vst [vmem:[#allocation75_spill] sm:$0xff] %v3028_v30  ;;  %v3033_v46 = vpack.c.bf16 %v818_v48, %v806_v34  ;;  %v829_v49 = vsub.f32 %v3662_v22, %v828_v7  ;;  %v824_v57 = vand.u32 4294901760, %v823_v40  ;;  %v841_v0 = vsub.f32 %v2757_v4, %v840_v2  ;;  %v3667_v30 = vld [vmem:[#allocation19_spill] sm:$0xff]  ;;  %v3668_v34 = vld [vmem:[#allocation13_spill] sm:$0xff] }
  0xc4   : > { %3665 = vst [vmem:[#allocation79_spill] sm:$0xff] %v3035_v13  ;;  %v3038_v16 = vpack.c.bf16 %v846_v32, %v834_v26  ;;  %v835_v52 = vsub.f32 %v2759_v61, %v834_v26  ;;  %v847_v20 = vsub.f32 %v3664_v24, %v846_v32  ;;  %v3682_v32 = vld [vmem:[#allocation60_spill] sm:$0xff]  ;;  %v3684_v26 = vld [vmem:[#allocation62_spill] sm:$0xff]  ;;  %v2349_v54 = vmov 0.0  }
  0xc5   : > { %v830_v45 = vand.u32 4294901760, %v829_v49  ;;  %v3047_v13 = vpack.c.bf16 %v824_v57, %v812_v35  ;;  %v842_v3 = vand.u32 4294901760, %v841_v0  ;;  %v3679_v57 = vld [vmem:[#allocation51_spill] sm:$0xff]  ;;  %v3681_v0 = vld [vmem:[#allocation54_spill] sm:$0xff]  ;;  %v3500_v31 = vmov 1.0  }
  0xc6   : > { %3666 = vst [vmem:[#allocation129_spill] sm:$0xff] %v3038_v16  ;;  %v836_v7 = vand.u32 4294901760, %v835_v52  ;;  %v848_v16 = vand.u32 4294901760, %v847_v20  ;;  %v3683_v20 = vlaneseq }
  0xc7   : > { %v3057_v49 = vpack.c.bf16 %v842_v3, %v830_v45  ;;  %v3677_v3 = vld [vmem:[#allocation48_spill] sm:$0xff] }
  0xc8   : > { %v3065_v52 = vpack.c.bf16 %v848_v16, %v836_v7  ;;  %v3669_v16 = vld [vmem:[#allocation37_spill] sm:$0xff]  ;;  %v245_v40 = vand.u32 127, %v3683_v20 }
  0xca   : > { %v246_v62 = vadd.s32 128, %v245_v40 }
  0xd2   : > { %v242_v2 = vpop.permute.xlu0 %241 }
  0xd3   : > { %v243_v45 = vadd.s32 128, %v242_v2  ;;  %v3758_v2 = vpack.c.bf16 %v2548_v33, %v2542_v29  ;;  %v3765_v29 = vld [vmem:[#allocation20_spill] sm:$0xff]  ;;  %v3766_v33 = vpack.c.bf16 %v2580_v1, %v2572_v58  ;;  %v3773_v58 = vld [vmem:[#allocation25_spill] sm:$0xff]  ;;  %v3774_v1 = vpack.c.bf16 %v2611_v38, %v2609_v37  ;;  %v3787_v38 = vld [vmem:[#allocation31_spill] sm:$0xff] }
  0xd4   : > { %v3786_v37 = vld [vmem:[#allocation36_spill] sm:$0xff] }
  0xd5   : > { %vm249_vm0 = vcmp.eq.s32.totalorder %v245_v40, %v243_v45  ;;  %vm250_vm3 = vcmp.eq.s32.totalorder %v246_v62, %v243_v45 }
  0xd6   : > { %v235_v60 = vpop.permute.xlu0 %234 }
  0xd7   : > { %vm247_vm1 = vcmp.eq.s32.totalorder %v245_v40, %v235_v60  ;;  %vm248_vm2 = vcmp.eq.s32.totalorder %v246_v62, %v235_v60  ;;  %v3693_v62 = vld [vmem:[#allocation80_spill] sm:$0xff] }
  0xd8   : > { %vm3106_vm4 = vmor %vm247_vm1, %vm249_vm0 }
  0xd9   : > { %vm3110_vm5 = vmor %vm248_vm2, %vm250_vm3  ;;  %v1741_v48 = vsel %vm3106_vm4, 1.0, %v2349_v54 }
  0xda   : > { %v1742_v40 = vsel %vm3110_vm5, 1.0, %v2349_v54  ;;  %v3118_v60 = vsub.f32 %v1741_v48, %v1741_v48 }
  0xdb   : > { %v3122_v45 = vsub.f32 %v1742_v40, %v1742_v40  ;;  %v3700_v40 = vld [vmem:[#allocation86_spill] sm:$0xff] }
  0xdc   : > { %3692 = vst [vmem:[#allocation19_spill] sm:$0xff] %v3118_v60  ;;  %v457_v9 = vand.u32 4294901760, %v3118_v60 }
  0xdd   : > { %v451_v7 = vand.u32 4294901760, %v3122_v45 }
  0xde   : > { %v458_v35 = vsub.f32 %v3118_v60, %v457_v9  ;;  %v3694_v60 = vld [vmem:[#allocation81_spill] sm:$0xff] }
  0xdf   : > { %1193 = vmatprep.mubr.f32.mxu0 %v451_v7  ;;  %v452_v54 = vsub.f32 %v3122_v45, %v451_v7  ;;  %v3696_v7 = vld [vmem:[#allocation82_spill] sm:$0xff] }
  0xe0   : > { %1197 = vmatmul.mubr.f32.vlgmr.msra.gmra.mrb[0].mxu0 %v457_v9  ;;  %v459_v48 = vand.u32 4294901760, %v458_v35  ;;  %v3697_v9 = vld [vmem:[#allocation85_spill] sm:$0xff]  ;;  %v3698_v35 = vld [vmem:[#allocation84_spill] sm:$0xff] }
  0xe1   : > { %2014 = vmatpush1.bf16.msra.mxu0 %v3693_v62  ;;  %1745 = vmatprep.mubr.msk.f32.mxu0 %vm3110_vm5, %v3500_v31  ;;  %v453_v36 = vand.u32 4294901760, %v452_v54  ;;  %v3699_v62 = vld [vmem:[#allocation87_spill] sm:$0xff]  ;;  %v3701_v54 = vld [vmem:[#allocation88_spill] sm:$0xff] }
  0xe2   : > { %2016 = vmatprep.subr.bf16.mxu0 %v3694_v60  ;;  %v3703_v60 = vld [vmem:[#allocation91_spill] sm:$0xff] }
  0xe3   : > { %454 = vmatprep.mubr.f32.mxu1 %v453_v36  ;;  %v3702_v36 = vld [vmem:[#allocation89_spill] sm:$0xff] }
  0xe4   : > { %460 = vmatmul.mubr.f32.vlgmr.msra.gmra.mrb[0].mxu1 %v459_v48  ;;  %v3705_v48 = vld [vmem:[#allocation93_spill] sm:$0xff] }
  0xe5   : > { %1822 = vmatpush1.bf16.msra.mxu1 %v3695_v15  ;;  %2018 = vmatpush1.bf16.msra.mxu0 %v3696_v7  ;;  %v3704_v15 = vld [vmem:[#allocation90_spill] sm:$0xff]  ;;  %v3706_v7 = vld [vmem:[#allocation92_spill] sm:$0xff] }
  0xe6   : > { %1743 = vmatprep.mubr.msk.f32.mxu1 %vm3110_vm5, %v3500_v31  ;;  %1824 = vmatprep.subr.bf16.mxu1 %v3697_v9  ;;  %v3707_v31 = vld [vmem:[#allocation95_spill] sm:$0xff]  ;;  %v3708_v9 = vld [vmem:[#allocation94_spill] sm:$0xff] }
  0xe7   : > { %2020 = vmatprep.subr.bf16.mxu0 %v3698_v35  ;;  %v3709_v35 = vld [vmem:[#allocation97_spill] sm:$0xff] }
  0xe9   : > { %1826 = vmatpush1.bf16.msra.mxu1 %v3699_v62  ;;  %2022 = vmatpush1.bf16.msra.mxu0 %v3700_v40  ;;  %v3710_v62 = vld [vmem:[#allocation96_spill] sm:$0xff]  ;;  %v3711_v40 = vld [vmem:[#allocation99_spill] sm:$0xff] }
  0xea   : > { %1828 = vmatprep.subr.bf16.mxu1 %v3701_v54  ;;  %2024 = vmatprep.subr.bf16.mxu0 %v3702_v36  ;;  %v3712_v54 = vld [vmem:[#allocation98_spill] sm:$0xff]  ;;  %v3713_v36 = vld [vmem:[#allocation100_spill] sm:$0xff] }
  0xed   : > { %1830 = vmatpush1.bf16.msra.mxu1 %v3703_v60  ;;  %2026 = vmatpush1.bf16.msra.mxu0 %v3704_v15  ;;  %v3714_v60 = vld [vmem:[#allocation101_spill] sm:$0xff]  ;;  %v3715_v15 = vld [vmem:[#allocation34_spill] sm:$0xff] }
  0xee   : > { %1832 = vmatprep.subr.bf16.mxu1 %v3705_v48  ;;  %2028 = vmatprep.subr.bf16.mxu0 %v3706_v7  ;;  %v3716_v48 = vld [vmem:[#allocation102_spill] sm:$0xff]  ;;  %v3717_v7 = vld [vmem:[#allocation103_spill] sm:$0xff] }
  0xf1   : > { %1834 = vmatpush1.bf16.msra.mxu1 %v3707_v31  ;;  %2030 = vmatpush1.bf16.msra.mxu0 %v3708_v9  ;;  %v3718_v31 = vld [vmem:[#allocation35_spill] sm:$0xff]  ;;  %v3719_v9 = vld [vmem:[#allocation105_spill] sm:$0xff] }
  0xf2   : > { %1836 = vmatprep.subr.bf16.mxu1 %v3709_v35  ;;  %2032 = vmatprep.subr.bf16.mxu0 %v3710_v62  ;;  %v3720_v35 = vld [vmem:[#allocation104_spill] sm:$0xff]  ;;  %v3721_v62 = vld [vmem:[#allocation107_spill] sm:$0xff] }
  0xf5   : > { %1838 = vmatpush1.bf16.msra.mxu1 %v3711_v40  ;;  %2034 = vmatpush1.bf16.msra.mxu0 %v3712_v54  ;;  %v3722_v40 = vld [vmem:[#allocation106_spill] sm:$0xff]  ;;  %v3723_v54 = vld [vmem:[#allocation109_spill] sm:$0xff] }
  0xf6   : > { %1840 = vmatprep.subr.bf16.mxu1 %v3713_v36  ;;  %2036 = vmatprep.subr.bf16.mxu0 %v3714_v60  ;;  %v3724_v36 = vld [vmem:[#allocation108_spill] sm:$0xff]  ;;  %v3725_v60 = vld [vmem:[#allocation110_spill] sm:$0xff] }
  0xf9   : > { %1842 = vmatpush1.bf16.msra.mxu1 %v3715_v15  ;;  %2038 = vmatpush1.bf16.msra.mxu0 %v3716_v48  ;;  %v3726_v15 = vld [vmem:[#allocation111_spill] sm:$0xff]  ;;  %v3727_v48 = vld [vmem:[#allocation113_spill] sm:$0xff] }
  0xfa   : > { %1844 = vmatprep.subr.bf16.mxu1 %v3717_v7  ;;  %2040 = vmatprep.subr.bf16.mxu0 %v3718_v31  ;;  %v3728_v7 = vld [vmem:[#allocation112_spill] sm:$0xff]  ;;  %v3729_v31 = vld [vmem:[#allocation115_spill] sm:$0xff] }
  0xfd   : > { %1846 = vmatpush1.bf16.msra.mxu1 %v3719_v9  ;;  %2042 = vmatpush1.bf16.msra.mxu0 %v3720_v35  ;;  %v3730_v9 = vld [vmem:[#allocation114_spill] sm:$0xff]  ;;  %v3731_v35 = vld [vmem:[#allocation56_spill] sm:$0xff] }
  0xfe   : > { %1848 = vmatprep.subr.bf16.mxu1 %v3721_v62  ;;  %2044 = vmatprep.subr.bf16.mxu0 %v3722_v40  ;;  %v3732_v62 = vld [vmem:[#allocation116_spill] sm:$0xff]  ;;  %v3733_v40 = vld [vmem:[#allocation117_spill] sm:$0xff] }
 0x101   : > { %1850 = vmatpush1.bf16.msra.mxu1 %v3723_v54  ;;  %2046 = vmatpush1.bf16.msra.mxu0 %v3724_v36  ;;  %v3734_v54 = vld [vmem:[#allocation57_spill] sm:$0xff]  ;;  %v3735_v36 = vld [vmem:[#allocation119_spill] sm:$0xff] }
 0x102   : > { %1852 = vmatprep.subr.bf16.mxu1 %v3725_v60  ;;  %2048 = vmatprep.subr.bf16.mxu0 %v3726_v15  ;;  %v3736_v60 = vld [vmem:[#allocation118_spill] sm:$0xff]  ;;  %v3737_v15 = vld [vmem:[#allocation64_spill] sm:$0xff] }
 0x105   : > { %1854 = vmatpush1.bf16.msra.mxu1 %v3727_v48  ;;  %2050 = vmatpush1.bf16.msra.mxu0 %v3728_v7  ;;  %v3738_v48 = vld [vmem:[#allocation66_spill] sm:$0xff]  ;;  %v3739_v7 = vld [vmem:[#allocation121_spill] sm:$0xff] }
 0x106   : > { %1856 = vmatprep.subr.bf16.mxu1 %v3729_v31  ;;  %2052 = vmatprep.subr.bf16.mxu0 %v3730_v9  ;;  %v3740_v31 = vld [vmem:[#allocation120_spill] sm:$0xff]  ;;  %v3741_v9 = vld [vmem:[#allocation123_spill] sm:$0xff] }
 0x109   : > { %1858 = vmatpush1.bf16.msra.mxu1 %v3731_v35  ;;  %2054 = vmatpush1.bf16.msra.mxu0 %v3732_v62  ;;  %v3742_v35 = vld [vmem:[#allocation122_spill] sm:$0xff]  ;;  %v3743_v62 = vld [vmem:[#allocation125_spill] sm:$0xff] }
 0x10a   : > { %1860 = vmatprep.subr.bf16.mxu1 %v3733_v40  ;;  %2056 = vmatprep.subr.bf16.mxu0 %v3734_v54  ;;  %v3744_v40 = vld [vmem:[#allocation124_spill] sm:$0xff]  ;;  %v3745_v54 = vld [vmem:[#allocation127_spill] sm:$0xff] }
 0x10d   : > { %1862 = vmatpush1.bf16.msra.mxu1 %v3735_v36  ;;  %2058 = vmatpush1.bf16.msra.mxu0 %v3736_v60  ;;  %v3746_v36 = vld [vmem:[#allocation126_spill] sm:$0xff]  ;;  %v3747_v60 = vld [vmem:[#allocation75_spill] sm:$0xff] }
 0x10e   : > { %1864 = vmatprep.subr.bf16.mxu1 %v3737_v15  ;;  %2060 = vmatprep.subr.bf16.mxu0 %v3738_v48  ;;  %v3748_v15 = vld [vmem:[#allocation128_spill] sm:$0xff]  ;;  %v3749_v48 = vld [vmem:[#allocation79_spill] sm:$0xff] }
 0x111   : > { %1866 = vmatpush1.bf16.msra.mxu1 %v3739_v7  ;;  %2062 = vmatpush1.bf16.msra.mxu0 %v3740_v31  ;;  %v3750_v7 = vld [vmem:[#allocation129_spill] sm:$0xff]  ;;  %v3751_v31 = vld [vmem:[#allocation11_spill] sm:$0xff] }
 0x112   : > { %1868 = vmatprep.subr.bf16.mxu1 %v3741_v9  ;;  %2064 = vmatprep.subr.bf16.mxu0 %v3742_v35  ;;  %v3752_v9 = vmov 1.0   ;;  %v3753_v35 = vld [vmem:[#allocation12_spill] sm:$0xff] }
 0x115   : > { %1870 = vmatpush1.bf16.msra.mxu1 %v3743_v62  ;;  %2066 = vmatpush1.bf16.msra.mxu0 %v3744_v40  ;;  %v3761_v62 = vld [vmem:[#allocation17_spill] sm:$0xff] }
 0x116   : > { %1872 = vmatprep.subr.bf16.mxu1 %v3745_v54  ;;  %2068 = vmatprep.subr.bf16.mxu0 %v3746_v36  ;;  %v3780_v54 = vld [vmem:[#allocation26_spill] sm:$0xff] }
 0x119   : > { %1874 = vmatpush1.bf16.msra.mxu1 %v3747_v60  ;;  %2070 = vmatpush1.bf16.msra.mxu0 %v3748_v15  ;;  %v3784_v60 = vld [vmem:[#allocation28_spill] sm:$0xff] }
 0x11a   : > { %1876 = vmatprep.subr.bf16.mxu1 %v3033_v46  ;;  %2072 = vmatprep.subr.bf16.mxu0 %v3749_v48  ;;  %v3754_v46 = vpack.c.bf16 %v3667_v30, %v2534_v21  ;;  %v3759_v21 = vld [vmem:[#allocation16_spill] sm:$0xff]  ;;  %v3760_v30 = vpack.c.bf16 %v2557_v44, %v2555_v43  ;;  %v3767_v43 = vld [vmem:[#allocation21_spill] sm:$0xff]  ;;  %v3768_v44 = vpack.c.bf16 %v2591_v12, %v2589_v11  ;;  %v3776_v12 = vld [vmem:[#allocation23_spill] sm:$0xff] }
 0x11b   : > { %v3775_v11 = vld [vmem:[#allocation29_spill] sm:$0xff]  ;;  %v3777_v40 = vpack.c.bf16 %v2619_v53, %v3776_v12  ;;  %v3788_v48 = vpack.c.bf16 %v3605_v10, %v3787_v38  ;;  %v3789_v53 = vld [vmem:[#allocation40_spill] sm:$0xff]  ;;  %v3799_v10 = vld [vmem:[#allocation50_spill] sm:$0xff] }
 0x11d   : > { %1878 = vmatpush1.bf16.msra.mxu1 %v3047_v13  ;;  %2074 = vmatpush1.bf16.msra.mxu0 %v3750_v7  ;;  %v3755_v13 = vld [vmem:[#allocation14_spill] sm:$0xff]  ;;  %v3790_v7 = vpack.c.bf16 %v3669_v16, %v3607_v42  ;;  %v3803_v42 = vld [vmem:[#allocation52_spill] sm:$0xff]  ;;  %v3804_v16 = vpack.c.bf16 %v3677_v3, %v3676_v39  ;;  %v3812_v39 = vld [vmem:[#allocation65_spill] sm:$0xff] }
 0x11e   : > { %1880 = vmatprep.subr.bf16.mxu1 %v3057_v49  ;;  %2076 = vmatprep.subr.bf16.mxu0 %v3751_v31  ;;  %v3756_v49 = vpack.c.bf16 %v3668_v34, %v2538_v27  ;;  %v3762_v27 = vpack.c.bf16 %v2564_v51, %v2562_v50  ;;  %v3763_v34 = vld [vmem:[#allocation18_spill] sm:$0xff]  ;;  %v3770_v51 = vpack.c.bf16 %v2597_v18, %v2595_v17  ;;  %v3778_v17 = vld [vmem:[#allocation32_spill] sm:$0xff]  ;;  %v3779_v18 = vld [vmem:[#allocation27_spill] sm:$0xff] }
 0x11f   : > { %v3769_v50 = vld [vmem:[#allocation22_spill] sm:$0xff]  ;;  %v3781_v36 = vpack.c.bf16 %v3779_v18, %v3780_v54 }
 0x120   : > { %1746 = vmatmul.mubr.msk.f32.vlgmr.msra.gmra.mrb[0].mxu0 %vm3106_vm4, %v3752_v9  ;;  %v3791_v31 = vld [vmem:[#allocation42_spill] sm:$0xff] }
 0x121   : > { %1882 = vmatpush1.bf16.msra.mxu1 %v3065_v52  ;;  %2078 = vmatpush1.bf16.msra.mxu0 %v3753_v35  ;;  %v3757_v52 = vld [vmem:[#allocation15_spill] sm:$0xff]  ;;  %v3813_v3 = vld [vmem:[#allocation58_spill] sm:$0xff] }
 0x122   : > { %1747 = vmatprep.mubr.msk.f32.mxu0 %vm3110_vm5, %v3752_v9  ;;  %1884 = vmatprep.subr.bf16.mxu1 %v3754_v46  ;;  %v3792_v35 = vld [vmem:[#allocation39_spill] sm:$0xff]  ;;  %v3793_v46 = vld [vmem:[#allocation38_spill] sm:$0xff] }
 0x123   : > { %2080 = vmatprep.subr.bf16.mxu0 %v3755_v13  ;;  %v3794_v13 = vpack.c.bf16 %v3792_v35, %v3793_v46 }
 0x124   : > { %1744 = vmatmul.mubr.msk.f32.vlgmr.msra.gmra.mrb[0].mxu1 %vm3106_vm4, %v3752_v9 }
 0x125   : > { %1886 = vmatpush1.bf16.msra.mxu1 %v3756_v49  ;;  %1053 = vmatprep.mubr.f32.mxu1 %v3122_v45  ;;  %v3764_v45 = vpack.c.bf16 %v2570_v56, %v2568_v55  ;;  %v3771_v55 = vld [vmem:[#allocation24_spill] sm:$0xff]  ;;  %v3772_v56 = vpack.c.bf16 %v2603_v6, %v2599_v19  ;;  %v3782_v19 = vld [vmem:[#allocation33_spill] sm:$0xff]  ;;  %v3783_v6 = vld [vmem:[#allocation30_spill] sm:$0xff] }
 0x126   : > { %2082 = vmatpush1.bf16.msra.mxu0 %v3757_v52  ;;  %1888 = vmatprep.subr.bf16.mxu1 %v3758_v2  ;;  %v3785_v15 = vpack.c.bf16 %v3783_v6, %v3784_v60  ;;  %v3795_v49 = vld [vmem:[#allocation45_spill] sm:$0xff]  ;;  %v3796_v52 = vld [vmem:[#allocation43_spill] sm:$0xff] }
 0x127   : > { %2084 = vmatprep.subr.bf16.mxu0 %v3759_v21  ;;  %v3797_v2 = vld [vmem:[#allocation41_spill] sm:$0xff] }
 0x128   : > { %v3798_v21 = vpack.c.bf16 %v3796_v52, %v3797_v2 }
 0x129   : > { %1890 = vmatpush1.bf16.msra.mxu1 %v3760_v30  ;;  %v3800_v30 = vld [vmem:[#allocation46_spill] sm:$0xff] }
 0x12a   : > { %2086 = vmatpush1.bf16.msra.mxu0 %v3761_v62  ;;  %1892 = vmatprep.subr.bf16.mxu1 %v3762_v27  ;;  %v3801_v62 = vld [vmem:[#allocation44_spill] sm:$0xff] }
 0x12b   : > { %2088 = vmatprep.subr.bf16.mxu0 %v3763_v34  ;;  %v3802_v27 = vpack.c.bf16 %v3800_v30, %v3801_v62  ;;  %v3805_v34 = vld [vmem:[#allocation55_spill] sm:$0xff] }
 0x12d   : > { %1894 = vmatpush1.bf16.msra.mxu1 %v3764_v45  ;;  %v3806_v45 = vld [vmem:[#allocation49_spill] sm:$0xff] }
 0x12e   : > { %2090 = vmatpush1.bf16.msra.mxu0 %v3765_v29  ;;  %1896 = vmatprep.subr.bf16.mxu1 %v3766_v33  ;;  %v3807_v29 = vpack.c.bf16 %v3679_v57, %v3806_v45  ;;  %v3808_v33 = vld [vmem:[#allocation59_spill] sm:$0xff]  ;;  %v3815_v57 = vld [vmem:[#allocation68_spill] sm:$0xff] }
 0x12f   : > { %2092 = vmatprep.subr.bf16.mxu0 %v3767_v43  ;;  %v3809_v43 = vpack.c.bf16 %v3681_v0, %v3680_v14  ;;  %v3817_v14 = vld [vmem:[#allocation69_spill] sm:$0xff]  ;;  %v3818_v0 = vpack.c.bf16 %v3648_v28, %v3647_v59  ;;  %v3829_v28 = vld [vmem:[#allocation74_spill] sm:$0xff] }
 0x130   : > { %v3828_v59 = vld [vmem:[#allocation77_spill] sm:$0xff]  ;;  %v3830_v12 = vpack.c.bf16 %v2749_v41, %v3829_v28 }
 0x131   : > { %1898 = vmatpush1.bf16.msra.mxu1 %v3768_v44  ;;  %v3810_v44 = vld [vmem:[#allocation61_spill] sm:$0xff] }
 0x132   : > { %2094 = vmatpush1.bf16.msra.mxu0 %v3769_v50  ;;  %1900 = vmatprep.subr.bf16.mxu1 %v3770_v51  ;;  %v3811_v50 = vpack.c.bf16 %v3638_v25, %v3636_v23  ;;  %v3814_v51 = vpack.c.bf16 %v3682_v32, %v3813_v3  ;;  %v3819_v25 = vld [vmem:[#allocation70_spill] sm:$0xff]  ;;  %v3820_v23 = vld [vmem:[#allocation67_spill] sm:$0xff]  ;;  %v3822_v32 = vld [vmem:[#allocation73_spill] sm:$0xff] }
 0x133   : > { %2096 = vmatprep.subr.bf16.mxu0 %v3771_v55  ;;  %v3816_v55 = vpack.c.bf16 %v3685_v8, %v3684_v26  ;;  %v3826_v8 = vld [vmem:[#allocation76_spill] sm:$0xff]  ;;  %v3827_v26 = vpack.c.bf16 %v2743_v63, %v2741_v47  ;;  %v3833_v47 = vpack.c.bf16 %v3664_v24, %v2759_v61  ;;  %v3834_v63 = vld [vmem:[#allocation19_spill] sm:$0xff] }
 0x135   : > { %1902 = vmatpush1.bf16.msra.mxu1 %v3772_v56  ;;  %v3821_v56 = vpack.c.bf16 %v2729_v5, %v3820_v23  ;;  %v3831_v5 = vld [vmem:[#allocation78_spill] sm:$0xff] }
 0x136   : > { %2098 = vmatpush1.bf16.msra.mxu0 %v3773_v58  ;;  %1904 = vmatprep.subr.bf16.mxu1 %v3774_v1  ;;  %v3823_v58 = vld [vmem:[#allocation72_spill] sm:$0xff]  ;;  %v3824_v1 = vld [vmem:[#allocation71_spill] sm:$0xff] }
 0x137   : > { %2100 = vmatprep.subr.bf16.mxu0 %v3775_v11  ;;  %v3825_v11 = vpack.c.bf16 %v3823_v58, %v3824_v1 }
 0x139   : > { %1906 = vmatpush1.bf16.msra.mxu1 %v3777_v40  ;;  %v3832_v40 = vpack.c.bf16 %v2757_v4, %v3662_v22 }
 0x13a   : > { %2102 = vmatpush1.bf16.msra.mxu0 %v3778_v17  ;;  %1908 = vmatprep.subr.bf16.mxu1 %v3781_v36  ;;  %v2351_v17 = vmov 0  }
 0x13b   : > { %2104 = vmatprep.subr.bf16.mxu0 %v3782_v19  ;;  %2211 = vset.pattern.permute.xlu1 %v2351_v17 }
 0x13c   : > { %2212 = vset.pattern.permute.xlu0 %v2351_v17 }
 0x13d   : > { %1910 = vmatpush1.bf16.msra.mxu1 %v3785_v15 }
 0x13e   : > { %2106 = vmatpush1.bf16.msra.mxu0 %v3786_v37  ;;  %1912 = vmatprep.subr.bf16.mxu1 %v3788_v48  ;;  %v1749_v37 = vld [vmem:[%s3401_s2] ss:$0 sm:$0xff] }
 0x13f   : > { %2108 = vmatprep.subr.bf16.mxu0 %v3789_v53  ;;  %v1750_v48 = vld [vmem:[%s3402_s3] ss:$0 sm:$0xff] }
 0x141   : > { %1914 = vmatpush1.bf16.msra.mxu1 %v3790_v7 }
 0x142   : > { %2110 = vmatpush1.bf16.msra.mxu0 %v3791_v31  ;;  %1916 = vmatprep.subr.bf16.mxu1 %v3794_v13 }
 0x143   : > { %2112 = vmatprep.subr.bf16.mxu0 %v3795_v49 }
 0x145   : > { %1918 = vmatpush1.bf16.msra.mxu1 %v3798_v21 }
 0x146   : > { %2114 = vmatpush1.bf16.msra.mxu0 %v3799_v10  ;;  %1920 = vmatprep.subr.bf16.mxu1 %v3802_v27 }
 0x147   : > { %2116 = vmatprep.subr.bf16.mxu0 %v3803_v42 }
 0x149   : > { %1922 = vmatpush1.bf16.msra.mxu1 %v3804_v16 }
 0x14a   : > { %2118 = vmatpush1.bf16.msra.mxu0 %v3805_v34  ;;  %1924 = vmatprep.subr.bf16.mxu1 %v3807_v29 }
 0x14b   : > { %2120 = vmatprep.subr.bf16.mxu0 %v3808_v33 }
 0x14d   : > { %1926 = vmatpush1.bf16.msra.mxu1 %v3809_v43 }
 0x14e   : > { %2122 = vmatpush1.bf16.msra.mxu0 %v3810_v44  ;;  %1928 = vmatprep.subr.bf16.mxu1 %v3811_v50 }
 0x14f   : > { %2124 = vmatprep.subr.bf16.mxu0 %v3812_v39 }
 0x151   : > { %1930 = vmatpush1.bf16.msra.mxu1 %v3814_v51 }
 0x152   : > { %2126 = vmatpush1.bf16.msra.mxu0 %v3815_v57  ;;  %1932 = vmatprep.subr.bf16.mxu1 %v3816_v55 }
 0x153   : > { %2128 = vmatprep.subr.bf16.mxu0 %v3817_v14 }
 0x155   : > { %1934 = vmatpush1.bf16.msra.mxu1 %v3818_v0 }
 0x156   : > { %2130 = vmatpush1.bf16.msra.mxu0 %v3819_v25  ;;  %1936 = vmatprep.subr.bf16.mxu1 %v3821_v56 }
 0x157   : > { %2132 = vmatprep.subr.bf16.mxu0 %v3822_v32 }
 0x159   : > { %1938 = vmatpush1.bf16.msra.mxu1 %v3825_v11 }
 0x15a   : > { %2134 = vmatpush1.bf16.msra.mxu0 %v3826_v8  ;;  %1940 = vmatprep.subr.bf16.mxu1 %v3827_v26 }
 0x15b   : > { %2136 = vmatprep.subr.bf16.mxu0 %v3828_v59 }
 0x15d   : > { %1942 = vmatpush1.bf16.msra.mxu1 %v3830_v12 }
 0x15e   : > { %2138 = vmatpush1.bf16.msra.mxu0 %v3831_v5  ;;  %1944 = vmatprep.subr.bf16.mxu1 %v3832_v40 }
 0x161   : > { %1748 = vmatmul.mubr.msk.f32.vlgmr.msra.gmra.mrb[0].mxu0 %vm3106_vm4, %v3752_v9  ;;  %1946 = vmatpush1.bf16.msra.mxu1 %v3833_v47 }
 0x164   : > { %1056 = vmatmul.mubr.f32.vlgmr.msra.gmra.mrb[0].mxu1 %v3834_v63 }
 0x234   : > { %v1600_v41 = vpop.f32.mrb[0].mxu0 }
 0x235   : > { %v1602_v18 = vpop.f32.mrb[1].mxu0 }
 0x237   : > { %v1057_v54 = vpop.f32.mrb[0].mxu1 }
 0x238   : > { %v2139_v36 = vadd.f32 %v1600_v41, %v1057_v54  ;;  %v1059_v4 = vpop.f32.mrb[1].mxu1 }
 0x239   : > { %v2140_v22 = vadd.f32 %v1602_v18, %v1059_v4 }
 0x23b   : > { %v1605_v19 = vmul.f32 0.0078125, %v2140_v22 }
 0x23d   : > { %1608 = vperm.xlu1 %2211, %v1605_v19  }
 0x2bc   : > { %v1609_v20 = vpop.permute.xlu1 %1608 }
 0x2bd   : > { %v1611_v9 = vsub.f32 %v2139_v36, %v1609_v20 }
 0x2bf   : > { %v1612_v6 = vmul.f32 %v1611_v9, %v1611_v9 }
 0x2c1   : > { %1613 = vadd.xlane.f32.xlu1 %v1612_v6 }
 0x34e   : > { %v1614_v61 = vpop.xlane.xlu1 %1613 }
 0x34f   : > { %v1616_v24 = vmul.f32 0.0078125, %v1614_v61 }
 0x351   : > { %v1617_v60 = vadd.f32 1e-05, %v1616_v24 }
 0x353   : > { %2213 = vrsqrt.f32 %v1617_v60 }
 0x35d   : > { %v2214_v15 = vpop.eup %2213 }
 0x35e   : > { %v1619_v38 = vmul.f32 %v2214_v15, %v1611_v9 }
 0x360   : > { %v1627_v53 = vmul.f32 %v1749_v37, %v1619_v38 }
 0x362   : > { %v1635_v7 = vadd.f32 %v1750_v48, %v1627_v53 }
 0x364   : > { %1636 = vst [vmem:[%s227_s14] sm:$0xff] %v1635_v7 }
 0x365   : > { %2286 = shalt.err (!%p2283_p7)
}
 0x366   : > { %s2287_s25 = scalar_lea.hbm %s3355_s7, 128  ;;  %s2291_s23 = scalar_lea.hbm %s3403_s4, 256 }
 0x367   : > { %p2288_p9 = scmp.ne.s32.totalorder %s3355_s7, %s2287_s25  ;;  %p2292_p0 = scmp.lt.u32.totalorder %s3355_s7, %s3403_s4 }
 0x368   : > { %p2293_p1 = scmp.lt.u32.totalorder %s2291_s23, %s2287_s25  ;;  %p2295_p4 = scmp.lt.u32.totalorder %s2287_s25, %s3355_s7 }
 0x369   : > { %p2289_p2 = pnand %p2288_p9, %p2469_p12 }
 0x36a   : > { %p2294_p11 = por %p2293_p1, %p2292_p0 }
 0x36b   : > { %p2290_p5 = pneg %p2289_p2 }
 0x36c   : > { %p2296_p6 = por %p2295_p4, %p2294_p11 }
 0x36e   : > { %p2297_p8 = pnand %p2296_p6, %p2290_p5 }
 0x370   : > { %2300 = shalt.err (!%p2297_p8)
}
 0x371   : > { %2155 = dma.vmem_to_hbm [thread:$0]  (%p2469_p12), %s3357_s20, 128, %s3355_s7, %s1638_s26  }
 0x372 PF: > { %s1663_s29 = sand.u32 1, %s2331_s15   ;;  %p3835_p10 = scmp.ne.s32.totalorder %s3503_s22, 0 }
 0x373   : > { %p3836_p13 = scmp.ge.s32.totalorder %s2343_s18, 2  ;;  %s1664_s10 = scalar_lea.sflag [#allocation4], %s1663_s29 }
 0x375   : > { %p2166_p3 = pnand %p3836_p13, %p3835_p10 }
 0x377   : > { %2326 = dma.done.wait (!%p2166_p3), %s1664_s10, 128  }
 0x378   : > { %2328 = vsyncadd (!%p2166_p3), %s1664_s10, 4294967168  ;;  %p18_p7 = scmp.ge.s32.totalorder %s2434_s27, 4   ;;  %s3837_s15 = smov %s2335_s16 }
 0x379   : > { %s3838_s16 = smov %s2339_s17  ;;  %s3839_s17 = smov %s2465_s24 }
 0x37a   : > { %s3840_s18 = smov %s2434_s27  ;;  %20 = sbr.rel (!%p18_p7) target bundleno = 6 (0x6), region = 85 }
 0x381   :  { %1669 = vsyncpa [#allocation3], 1 }
 0x382   :  { %1671 = vsyncpa [#allocation3 + $0x1], 1 }
 0x383   :  { %1672 = vsyncpa [#allocation6], 1 }
 0x384   :  { %1673 = vsyncpa [#allocation4], 1 }
 0x385   :  { %1675 = vsyncpa [#allocation4 + $0x1], 1 }

</bundles_post_ra>
